<compile_context>
chip_gen: v6e
topology: v6e:2x2x1
jax: 0.10.0
libtpu: 0.0.40
codegen_flags: <defaults>
</compile_context>

<pallas_src>
import math
import functools

import jax
import jax.numpy as jnp
from jax import lax
from jax.experimental import pallas as pl
from jax.experimental.pallas import tpu as pltpu


def _round_up(x, m):
    return (x + m - 1) // m * m


def _vmem_capacity():
    try:
        return int(pltpu.get_tpu_info().vmem_capacity_bytes)
    except Exception:
        return 64 * 1024 * 1024          # conservative fallback (v7x per-TC)


def _choose_tile(P, CK, crows_list, batch):
    """Largest lane tile (multiple of 128) whose double-buffered tiles fit VMEM."""
    cap = _vmem_capacity()
    vmem_limit = min(cap // 2, 96 * 1024 * 1024)
    crows = max(crows_list)
    resident = crows * CK * 4 + crows * 4 * 128              # weights + bias
    budget = int(vmem_limit * 0.6) - resident
    p128 = _round_up(P, 128)
    tp = 128
    for cand in (2048, 1024, 512, 256, 128):
        if cand > p128:
            continue
        per_step = CK * cand * 4 + crows * cand * 4          # in tile + out tile (f32 bound)
        if 2 * per_step <= budget:
            tp = cand
            break
    # v7x megacore: a single-batch launch should still expose >= 2 grid steps.
    while batch * (p128 // tp) < 2 and tp > 128:
        tp //= 2
    return tp, vmem_limit


def _pad_axis(a, axis, size):
    pad = size - a.shape[axis]
    if pad == 0:
        return a
    cfg = [(0, 0)] * a.ndim
    cfg[axis] = (0, pad)
    return jnp.pad(a, cfg)


# ----------------------------- Pallas kernel --------------------------------

def _matmul_bias_kernel(sig_rows, cols_ref, w_ref, b_ref, out_ref):
    # cols_ref: (1, CKp, TP)    w_ref: (Crows, CKp)    b_ref: (Crows, 1)
    # out_ref : (1, Crows, TP) f32
    y = jnp.dot(w_ref[...], cols_ref[0],
                preferred_element_type=jnp.float32) + b_ref[...]
    if sig_rows is None:
        out_ref[0] = y
    else:
        # fused torch.sigmoid on the mask block only (static, 8-aligned split).
        out_ref[0, :sig_rows] = y[:sig_rows]
        out_ref[0, sig_rows:] = jax.nn.sigmoid(y[sig_rows:])


def _matmul_conv(cols, w2d, bias2d, sig_rows, tp, vmem_limit):
    N, CK, Pp = cols.shape
    Crows = w2d.shape[0]
    flops = 2 * N * Crows * CK * Pp
    trans = 0 if sig_rows is None else N * max(Crows - sig_rows, 0) * Pp
    bytes_accessed = (cols.size * cols.dtype.itemsize
                      + w2d.size * w2d.dtype.itemsize
                      + bias2d.size * 4 + N * Crows * Pp * 4)
    return pl.pallas_call(
        functools.partial(_matmul_bias_kernel, sig_rows),
        out_shape=jax.ShapeDtypeStruct((N, Crows, Pp), jnp.float32),
        grid=(N, Pp // tp),
        in_specs=[pl.BlockSpec((1, CK, tp), lambda n, p: (n, 0, p)),
                  pl.BlockSpec((Crows, CK), lambda n, p: (0, 0)),   # resident
                  pl.BlockSpec((Crows, 1), lambda n, p: (0, 0))],   # resident
        out_specs=pl.BlockSpec((1, Crows, tp), lambda n, p: (n, 0, p)),
        compiler_params=pltpu.CompilerParams(
            dimension_semantics=("parallel", "parallel"),
            vmem_limit_bytes=vmem_limit),
        cost_estimate=pl.CostEstimate(flops=int(flops),
                                      transcendentals=int(trans),
                                      bytes_accessed=int(bytes_accessed)),
    )(cols, w2d, bias2d)


# ------------------------------- JAX glue ------------------------------------

def _im2col(x, kh, kw, stride, padding, dilation, Ho, Wo):
    """Zero-padded im2col. Row order = c*K + (i*kw + j) (matches weight.reshape)."""
    N, C, H, W = x.shape
    sh, sw = stride
    ph, pw = padding
    dh, dw = dilation
    xp = jnp.pad(x, ((0, 0), (0, 0), (ph, ph), (pw, pw)))
    patches = []
    for i in range(kh):
        for j in range(kw):
            patches.append(xp[:, :,
                              i * dh: i * dh + sh * (Ho - 1) + 1: sh,
                              j * dw: j * dw + sw * (Wo - 1) + 1: sw])
    cols = jnp.stack(patches, axis=2)            # (N, C, K, Ho, Wo)
    return cols.reshape(N, C * kh * kw, Ho * Wo)


def dcn_forward(x, params, kernel_size, stride, padding, dilation, deformable_groups):
    kh, kw = kernel_size
    sh, sw = stride
    ph, pw = padding
    dh, dw = dilation
    dg = deformable_groups
    N, Cin, H, W = x.shape
    Cout = params["weight"].shape[0]
    K = kh * kw
    Ho = (H + 2 * ph - (dh * (kh - 1) + 1)) // sh + 1
    Wo = (W + 2 * pw - (dw * (kw - 1) + 1)) // sw + 1
    P = Ho * Wo
    cpg = Cin // dg

    # layout / tile parameters
    CK = Cin * K
    CK_pad = _round_up(CK, 16)
    Cout_pad = _round_up(Cout, 16)               # bf16 (16, 128) sublane tile
    off_rows = _round_up(2 * dg * K, 8)          # sigmoid block starts 8-aligned
    C_om_pad = _round_up(off_rows + dg * K, 8)
    tp, vmem_limit = _choose_tile(P, CK_pad, [Cout_pad, C_om_pad], N)
    P_pad = _round_up(P, tp)

    # ---- 1. conv_offset_mask: f32 im2col + Pallas matmul (sigmoid fused) -----
    # TODO(synk): cols0 is a K-fold expansion of x in HBM; a halo-tiled
    # in-kernel im2col would avoid it, but this conv is tiny (3*dg*K rows).
    cols0 = _im2col(x, kh, kw, (sh, sw), (ph, pw), (dh, dw), Ho, Wo)
    cols0 = _pad_axis(_pad_axis(cols0, 1, CK_pad), 2, P_pad)          # f32
    w_om = params["w_om"].reshape(dg * 3 * K, CK)
    b_om = params["b_om"]
    # reorder channels: offsets (o1,o2) stay at rows [0, 2*dg*K),
    # mask (o3) moves to the 8-aligned block starting at off_rows.
    w_om_p = jnp.zeros((C_om_pad, CK_pad), jnp.float32)
    w_om_p = w_om_p.at[:2 * dg * K, :CK].set(w_om[:2 * dg * K])
    w_om_p = w_om_p.at[off_rows:off_rows + dg * K, :CK].set(w_om[2 * dg * K:])
    b_om_p = jnp.zeros((C_om_pad, 1), jnp.float32)
    b_om_p = b_om_p.at[:2 * dg * K, 0].set(b_om[:2 * dg * K])
    b_om_p = b_om_p.at[off_rows:off_rows + dg * K, 0].set(b_om[2 * dg * K:])
    om_p = _matmul_conv(cols0, w_om_p, b_om_p, off_rows, tp, vmem_limit)

    # ---- 2. chunk: offset = cat(o1, o2); mask already sigmoid'ed in-kernel ---
    offset = om_p[:, :2 * dg * K, :P].reshape(N, 2 * dg * K, Ho, Wo)
    mask = om_p[:, off_rows:off_rows + dg * K, :P].reshape(N, dg * K, Ho, Wo)

    # ---- 3. deformable bilinear sampling + corner combine (XLA gather fusion) -
    # TODO(synk): the data-dependent 4-corner gather stays in XLA
    # (take_along_axis); an in-kernel gather needs a scalar-prefetched index
    # table plus manual DMA and is not implemented here.
    i_idx = jnp.repeat(jnp.arange(kh), kw)
    j_idx = jnp.tile(jnp.arange(kw), kh)
    h_base = (jnp.arange(Ho)[None, :] * sh - ph + i_idx[:, None] * dh).astype(jnp.float32)
    w_base = (jnp.arange(Wo)[None, :] * sw - pw + j_idx[:, None] * dw).astype(jnp.float32)

    cols_groups = []
    for g in range(dg):
        off_g = offset[:, g * 2 * K:(g + 1) * 2 * K]
        dy = off_g[:, 0::2]                        # (N, K, Ho, Wo)  offset_h
        dx = off_g[:, 1::2]                        # (N, K, Ho, Wo)  offset_w
        m_g = mask[:, g * K:(g + 1) * K]

        h_im = h_base[None, :, :, None] + dy
        w_im = w_base[None, :, None, :] + dx
        valid = (h_im > -1.0) & (w_im > -1.0) & (h_im < H) & (w_im < W)

        h_low = jnp.floor(h_im)
        w_low = jnp.floor(w_im)
        lh = h_im - h_low
        lw = w_im - w_low
        hh = 1.0 - lh
        hw = 1.0 - lw
        hl = h_low.astype(jnp.int32)
        wl = w_low.astype(jnp.int32)
        hhi = hl + 1
        whi = wl + 1

        def corner(hc, wc, wgt):
            ok = valid & (hc >= 0) & (hc <= H - 1) & (wc >= 0) & (wc <= W - 1)
            idx = jnp.clip(hc, 0, H - 1) * W + jnp.clip(wc, 0, W - 1)
            return idx, jnp.where(ok, wgt, 0.0)

        corners = [corner(hl, wl, hh * hw), corner(hl, whi, hh * lw),
                   corner(hhi, wl, lh * hw), corner(hhi, whi, lh * lw)]

        xg = x[:, g * cpg:(g + 1) * cpg].reshape(N, cpg, H * W)
        acc = None
        for idx, wgt in corners:
            idxf = idx.reshape(N, 1, K * P)
            val = jnp.take_along_axis(xg, idxf, axis=2).reshape(N, cpg, K, P)
            term = val * wgt.reshape(N, 1, K, P)
            acc = term if acc is None else acc + term
        cols_groups.append(acc * m_g.reshape(N, 1, K, P))        # (N, cpg, K, P)

    cols = cols_groups[0] if dg == 1 else jnp.concatenate(cols_groups, axis=1)
    cols = cols.reshape(N, CK, P).astype(jnp.bfloat16)           # row = c*K + k
    cols = _pad_axis(_pad_axis(cols, 1, CK_pad), 2, P_pad)

    # ---- 4. single (Cout x K*Cin) MXU matmul + bias (Pallas) -----------------
    w2d = params["weight"].reshape(Cout, CK).astype(jnp.bfloat16)
    w2d_p = jnp.zeros((Cout_pad, CK_pad), jnp.bfloat16).at[:Cout, :CK].set(w2d)
    bias_p = jnp.zeros((Cout_pad, 1), jnp.float32).at[:Cout, 0].set(params["bias"])
    out_p = _matmul_conv(cols, w2d_p, bias_p, None, tp, vmem_limit)

    out = out_p[:, :Cout, :P].reshape(N, Cout, Ho, Wo)
    intermediates = dict(cols0=cols0, om_p=om_p, cols=cols, w_om_p=w_om_p,
                         b_om_p=b_om_p, w2d_p=w2d_p, bias_p=bias_p, out_p=out_p)
    return out, intermediates


# --------------------------------- main ---------------------------------------

if __name__ == "__main__":
    # Module config (small, consistent with DCN(in_ch, out_ch, k=3, s=1, p=1)).
    N, Cin, H, W = 2, 4, 16, 16
    Cout = 8
    kernel_size = (3, 3)
    stride = (1, 1)
    padding = (1, 1)
    dilation = (1, 1)
    dg = 1
    K = kernel_size[0] * kernel_size[1]
    C_om = dg * 3 * K

    key = jax.random.PRNGKey(0)
    k1, k2, k3, k4 = jax.random.split(key, 4)

    # DCNv2.reset_parameters(): weight ~ U(-stdv, stdv), bias = 0.
    n_fan = Cin * kernel_size[0] * kernel_size[1]
    stdv = 1.0 / math.sqrt(n_fan)
    params = {
        "weight": jax.random.uniform(k1, (Cout, Cin, *kernel_size), jnp.float32,
                                     -stdv, stdv),
        "bias": jnp.zeros((Cout,), jnp.float32),
        # NOTE: the PyTorch module zero-inits conv_offset_mask (-> offsets 0,
        # mask 0.5).  Small deterministic random values are used instead so the
        # deformable bilinear-sampling path is actually exercised.
        "w_om": 0.1 * jax.random.normal(k2, (C_om, Cin, *kernel_size), jnp.float32),
        "b_om": 0.05 * jax.random.normal(k3, (C_om,), jnp.float32),
    }
    x = jax.random.normal(k4, (N, Cin, H, W), jnp.float32)

    fwd = jax.jit(functools.partial(dcn_forward,
                                    kernel_size=kernel_size, stride=stride,
                                    padding=padding, dilation=dilation,
                                    deformable_groups=dg))
    out, aux = fwd(x, params)
    out = jax.block_until_ready(out)

    Ho = (H + 2 * padding[0] - (dilation[0] * (kernel_size[0] - 1) + 1)) // stride[0] + 1
    Wo = (W + 2 * padding[1] - (dilation[1] * (kernel_size[1] - 1) + 1)) // stride[1] + 1
    P = Ho * Wo
    off_rows = (2 * dg * K + 7) // 8 * 8

    # --- check 1: offset-mask conv vs an independent XLA conv reference --------
    om_conv = lax.conv_general_dilated(
        x, params["w_om"], window_strides=stride,
        padding=[(padding[0], padding[0]), (padding[1], padding[1])],
        rhs_dilation=dilation, dimension_numbers=("NCHW", "OIHW", "NCHW"),
        precision=lax.Precision.HIGHEST) + params["b_om"][None, :, None, None]
    off_ref = om_conv[:, :2 * dg * K].reshape(N, 2 * dg * K, P)
    mask_ref = jax.nn.sigmoid(om_conv[:, 2 * dg * K:]).reshape(N, dg * K, P)
    assert jnp.allclose(aux["om_p"][:, :2 * dg * K, :P], off_ref, atol=2e-2, rtol=2e-2)
    assert jnp.allclose(aux["om_p"][:, off_rows:off_rows + dg * K, :P], mask_ref,
                        atol=2e-2, rtol=2e-2)

    # --- check 2: heavy Pallas matmul vs einsum on the identical bf16 cols -----
    out_full_ref = (jnp.einsum("ok,nkp->nop", aux["w2d_p"].astype(jnp.float32),
                               aux["cols"].astype(jnp.float32))
                    + aux["bias_p"][None, :, :])
    assert jnp.allclose(aux["out_p"], out_full_ref, atol=1e-2, rtol=1e-2)

    assert out.shape == (N, Cout, Ho, Wo)
    print("KERNEL_OK")
</pallas_src>

<mosaic_0001>
module attributes {stable_mosaic.version = 11 : i64} {
  func.func @_matmul_bias_kernel(%arg0: i32, %arg1: i32, %arg2: memref<1x48x256xf32, #tpu.memory_space<vmem>>, %arg3: memref<40x48xf32, #tpu.memory_space<vmem>>, %arg4: memref<40x1xf32, #tpu.memory_space<vmem>>, %arg5: memref<1x40x256xf32, #tpu.memory_space<vmem>>) attributes {dimension_semantics = [#tpu.dimension_semantics<parallel>, #tpu.dimension_semantics<parallel>], iteration_bounds = array<i64: 2, 1>, scalar_prefetch = 0 : i64, scratch_operands = 0 : i64, tpu.core_type = #tpu.core_type<tc>, window_params = [{transform_indices = @transform_0, window_bounds = array<i64: 1, 48, 256>}, {pipeline_mode = #tpu.pipeline_mode<synchronous>, transform_indices = @transform_1, window_bounds = array<i64: 40, 48>}, {pipeline_mode = #tpu.pipeline_mode<synchronous>, transform_indices = @transform_2, window_bounds = array<i64: 40, 1>}, {transform_indices = @transform_3, window_bounds = array<i64: 1, 40, 256>}]} {
    %c0 = arith.constant 0 : index
    %c0_0 = arith.constant 0 : index
    %0 = vector.load %arg3[%c0, %c0_0] : memref<40x48xf32, #tpu.memory_space<vmem>>, vector<40x48xf32>
    %c0_1 = arith.constant 0 : index
    %c0_2 = arith.constant 0 : index
    %c0_3 = arith.constant 0 : index
    %1 = vector.load %arg2[%c0_1, %c0_2, %c0_3] : memref<1x48x256xf32, #tpu.memory_space<vmem>>, vector<1x48x256xf32>
    %2 = vector.shape_cast %1 : vector<1x48x256xf32> to vector<48x256xf32>
    %cst = arith.constant dense<0.000000e+00> : vector<40x256xf32>
    %3 = tpu.matmul %0, %2, %cst {dimension_numbers = #tpu.dot_dimension_numbers<[1], [0], [0], [1], [0, 0, 1, 1], [], []>} : vector<40x48xf32>, vector<48x256xf32>, vector<40x256xf32> -> vector<40x256xf32>
    %c0_4 = arith.constant 0 : index
    %c0_5 = arith.constant 0 : index
    %4 = vector.load %arg4[%c0_4, %c0_5] : memref<40x1xf32, #tpu.memory_space<vmem>>, vector<40x1xf32>
    %5 = vector.broadcast %4 : vector<40x1xf32> to vector<40x256xf32>
    %6 = arith.addf %3, %5 : vector<40x256xf32>
    %7 = vector.extract_strided_slice %6 {offsets = [0, 0], sizes = [24, 256], strides = [1, 1]} : vector<40x256xf32> to vector<24x256xf32>
    %c0_6 = arith.constant 0 : index
    %c0_7 = arith.constant 0 : index
    %c0_8 = arith.constant 0 : index
    %8 = vector.load %arg5[%c0_6, %c0_7, %c0_8] : memref<1x40x256xf32, #tpu.memory_space<vmem>>, vector<1x24x256xf32>
    %9 = vector.shape_cast %8 : vector<1x24x256xf32> to vector<24x256xf32>
    %10 = vector.shape_cast %7 : vector<24x256xf32> to vector<1x24x256xf32>
    tpu.vector_store %arg5[%c0_6, %c0_7, %c0_8], %10 {strides = array<i32>} : memref<1x40x256xf32, #tpu.memory_space<vmem>>, vector<1x24x256xf32>,
    %11 = vector.extract_strided_slice %6 {offsets = [24, 0], sizes = [16, 256], strides = [1, 1]} : vector<40x256xf32> to vector<16x256xf32>
    %12 = arith.negf %11 : vector<16x256xf32>
    %13 = math.exp %12 : vector<16x256xf32>
    %cst_9 = arith.constant 1.000000e+00 : f32
    %14 = vector.broadcast %cst_9 : f32 to vector<16x256xf32>
    %15 = arith.addf %14, %13 : vector<16x256xf32>
    %16 = arith.divf %14, %15 : vector<16x256xf32>
    %c0_10 = arith.constant 0 : index
    %c24 = arith.constant 24 : index
    %c0_11 = arith.constant 0 : index
    %17 = vector.load %arg5[%c0_10, %c24, %c0_11] : memref<1x40x256xf32, #tpu.memory_space<vmem>>, vector<1x16x256xf32>
    %18 = vector.shape_cast %17 : vector<1x16x256xf32> to vector<16x256xf32>
    %19 = vector.shape_cast %16 : vector<16x256xf32> to vector<1x16x256xf32>
    tpu.vector_store %arg5[%c0_10, %c24, %c0_11], %19 {strides = array<i32>} : memref<1x40x256xf32, #tpu.memory_space<vmem>>, vector<1x16x256xf32>,
    return
  }
  func.func @transform_0(%arg0: i32, %arg1: i32) -> (i32, i32, i32) {
    %c0_i32 = arith.constant 0 : i32
    %c0_i32_0 = arith.constant 0 : i32
    return %arg0, %c0_i32, %arg1 : i32, i32, i32
  }
  func.func @transform_1(%arg0: i32, %arg1: i32) -> (i32, i32) {
    %c0_i32 = arith.constant 0 : i32
    %c0_i32_0 = arith.constant 0 : i32
    %c0_i32_1 = arith.constant 0 : i32
    return %c0_i32, %c0_i32_0 : i32, i32
  }
  func.func @transform_2(%arg0: i32, %arg1: i32) -> (i32, i32) {
    %c0_i32 = arith.constant 0 : i32
    %c0_i32_0 = arith.constant 0 : i32
    %c0_i32_1 = arith.constant 0 : i32
    return %c0_i32, %c0_i32_0 : i32, i32
  }
  func.func @transform_3(%arg0: i32, %arg1: i32) -> (i32, i32, i32) {
    %c0_i32 = arith.constant 0 : i32
    %c0_i32_0 = arith.constant 0 : i32
    return %arg0, %c0_i32, %arg1 : i32, i32, i32
  }
}

module attributes {stable_mosaic.version = 11 : i64} {
  func.func @_matmul_bias_kernel(%arg0: i32, %arg1: i32, %arg2: memref<1x48x256xbf16, #tpu.memory_space<vmem>>, %arg3: memref<16x48xbf16, #tpu.memory_space<vmem>>, %arg4: memref<16x1xf32, #tpu.memory_space<vmem>>, %arg5: memref<1x16x256xf32, #tpu.memory_space<vmem>>) attributes {dimension_semantics = [#tpu.dimension_semantics<parallel>, #tpu.dimension_semantics<parallel>], iteration_bounds = array<i64: 2, 1>, scalar_prefetch = 0 : i64, scratch_operands = 0 : i64, tpu.core_type = #tpu.core_type<tc>, window_params = [{transform_indices = @transform_0, window_bounds = array<i64: 1, 48, 256>}, {pipeline_mode = #tpu.pipeline_mode<synchronous>, transform_indices = @transform_1, window_bounds = array<i64: 16, 48>}, {pipeline_mode = #tpu.pipeline_mode<synchronous>, transform_indices = @transform_2, window_bounds = array<i64: 16, 1>}, {transform_indices = @transform_3, window_bounds = array<i64: 1, 16, 256>}]} {
    %c0 = arith.constant 0 : index
    %c0_0 = arith.constant 0 : index
    %0 = vector.load %arg3[%c0, %c0_0] : memref<16x48xbf16, #tpu.memory_space<vmem>>, vector<16x48xbf16>
    %c0_1 = arith.constant 0 : index
    %c0_2 = arith.constant 0 : index
    %c0_3 = arith.constant 0 : index
    %1 = vector.load %arg2[%c0_1, %c0_2, %c0_3] : memref<1x48x256xbf16, #tpu.memory_space<vmem>>, vector<1x48x256xbf16>
    %2 = vector.shape_cast %1 : vector<1x48x256xbf16> to vector<48x256xbf16>
    %cst = arith.constant dense<0.000000e+00> : vector<16x256xf32>
    %3 = tpu.matmul %0, %2, %cst {dimension_numbers = #tpu.dot_dimension_numbers<[1], [0], [0], [1], [0, 0, 1, 1], [], []>} : vector<16x48xbf16>, vector<48x256xbf16>, vector<16x256xf32> -> vector<16x256xf32>
    %c0_4 = arith.constant 0 : index
    %c0_5 = arith.constant 0 : index
    %4 = vector.load %arg4[%c0_4, %c0_5] : memref<16x1xf32, #tpu.memory_space<vmem>>, vector<16x1xf32>
    %5 = vector.broadcast %4 : vector<16x1xf32> to vector<16x256xf32>
    %6 = arith.addf %3, %5 : vector<16x256xf32>
    %c0_6 = arith.constant 0 : index
    %c0_7 = arith.constant 0 : index
    %c0_8 = arith.constant 0 : index
    %7 = vector.load %arg5[%c0_6, %c0_7, %c0_8] : memref<1x16x256xf32, #tpu.memory_space<vmem>>, vector<1x16x256xf32>
    %8 = vector.shape_cast %7 : vector<1x16x256xf32> to vector<16x256xf32>
    %9 = vector.shape_cast %6 : vector<16x256xf32> to vector<1x16x256xf32>
    tpu.vector_store %arg5[%c0_6, %c0_7, %c0_8], %9 {strides = array<i32>} : memref<1x16x256xf32, #tpu.memory_space<vmem>>, vector<1x16x256xf32>,
    return
  }
  func.func @transform_0(%arg0: i32, %arg1: i32) -> (i32, i32, i32) {
    %c0_i32 = arith.constant 0 : i32
    %c0_i32_0 = arith.constant 0 : i32
    return %arg0, %c0_i32, %arg1 : i32, i32, i32
  }
  func.func @transform_1(%arg0: i32, %arg1: i32) -> (i32, i32) {
    %c0_i32 = arith.constant 0 : i32
    %c0_i32_0 = arith.constant 0 : i32
    %c0_i32_1 = arith.constant 0 : i32
    return %c0_i32, %c0_i32_0 : i32, i32
  }
  func.func @transform_2(%arg0: i32, %arg1: i32) -> (i32, i32) {
    %c0_i32 = arith.constant 0 : i32
    %c0_i32_0 = arith.constant 0 : i32
    %c0_i32_1 = arith.constant 0 : i32
    return %c0_i32, %c0_i32_0 : i32, i32
  }
  func.func @transform_3(%arg0: i32, %arg1: i32) -> (i32, i32, i32) {
    %c0_i32 = arith.constant 0 : i32
    %c0_i32_0 = arith.constant 0 : i32
    return %arg0, %c0_i32, %arg1 : i32, i32, i32
  }
}

</mosaic_0001>

<bundles_post_ra>
// kernel: mul.37
= control target key start
LH: loop header
LB: loop body
LE: loop exit
PB: predicated region body
PF: predicated region fallthrough
CT: control target
= control target key end

     0   :  { %s67_s6 = smov 3  ;;  %s70_s7 = smov 12  ;;  %vm72_vm0 = vcmask 1043458   ;;  %vm77_vm1 = vcmask 1045508   ;;  %vm82_vm2 = vcmask 1047558   ;;  %vm4_vm3 = vcmask 1047556   ;;  %s2025_s0 = inlined_call_operand.vmem [shape: f32[2,9,16,16], index: 0, kind: input, shape index: {}]   ;;  %s2026_s1 = inlined_call_operand.vmem [shape: f32[2,9,256], index: 1, kind: output, shape index: {}]  }
   0x1   :  { %v1125_v0 = vld [vmem:[%s2025_s0 + $0x7] ss:$16 sm:%s67_s6]   ;;  %v1126_v1 = vld [vmem:[%s2025_s0 - $0x11] ss:$16 sm:%s70_s7]   ;;  %s75_s12 = smov 48  ;;  %s80_s13 = smov 192 }
   0x2   :  { %v73_v2 = vsel %vm72_vm0, %v1126_v1, %v1125_v0  ;;  %v1127_v3 = vld [vmem:[%s2025_s0 - $0x19] ss:$16 sm:%s75_s12]   ;;  %v1128_v4 = vld [vmem:[%s2025_s0 - $0x31] ss:$16 sm:%s80_s13]   ;;  %s124_s18 = smov 3  ;;  %s127_s21 = smov 12 }
   0x3   :  { %v78_v5 = vsel %vm77_vm1, %v1127_v3, %v73_v2  ;;  %v1133_v6 = vld [vmem:[%s2025_s0 + $0x87] ss:$16 sm:%s124_s18]   ;;  %s132_s22 = smov 48  ;;  %v1134_v8 = vld [vmem:[%s2025_s0 + $0x6f] ss:$16 sm:%s127_s21]   ;;  %s137_s27 = smov 192 }
   0x4   :  { %v83_v7 = vsel %vm82_vm2, %v1128_v4, %v78_v5  ;;  %v1135_v9 = vld [vmem:[%s2025_s0 + $0x67] ss:$16 sm:%s132_s22]   ;;  %s95_s28 = smov 3  ;;  %s1275_s29 = smov 112   ;;  %v130_v10 = vsel %vm72_vm0, %v1134_v8, %v1133_v6  ;;  %v1136_v11 = vld [vmem:[%s2025_s0 + $0x4f] ss:$16 sm:%s137_s27]  }
   0x5   :  { %84 = vrot.lane.b32.xlu0 %v83_v7, %s1275_s29  ;;  %s98_s3 = smov 12  ;;  %s103_s4 = smov 48  ;;  %v135_v12 = vsel %vm77_vm1, %v1135_v9, %v130_v10  ;;  %v1129_v13 = vld [vmem:[%s2025_s0 + $0x47] ss:$16 sm:%s95_s28]   ;;  %vm6_vm4 = vcmask 130048   ;;  %vm86_vm5 = vcmask 1048448  }
   0x6   :  { %v1130_v14 = vld [vmem:[%s2025_s0 + $0x2f] ss:$16 sm:%s98_s3]   ;;  %s108_s9 = smov 192  ;;  %s153_s10 = smov 3  ;;  %v140_v15 = vsel %vm82_vm2, %v1136_v11, %v135_v12  ;;  %v1131_v17 = vld [vmem:[%s2025_s0 + $0x27] ss:$16 sm:%s103_s4]  }
   0x7   :  { %v101_v16 = vsel %vm72_vm0, %v1130_v14, %v1129_v13  ;;  %v1132_v18 = vld [vmem:[%s2025_s0 + $0xf] ss:$16 sm:%s108_s9]   ;;  %s156_s15 = smov 12  ;;  %s161_s16 = smov 48  ;;  %141 = vrot.lane.b32.xlu1 %v140_v15, %s1275_s29  ;;  %vm216_vm6 = vcmask 917248   ;;  %vm346_vm7 = vcmask 786048  }
   0x8   :  { %v106_v19 = vsel %vm77_vm1, %v1131_v17, %v101_v16  ;;  %v1137_v20 = vld [vmem:[%s2025_s0 + $0xc7] ss:$16 sm:%s153_s10]   ;;  %s166_s19 = smov 192  ;;  %s182_s20 = smov 3  ;;  %v1138_v22 = vld [vmem:[%s2025_s0 + $0xaf] ss:$16 sm:%s156_s15]  }
   0x9   :  { %v111_v21 = vsel %vm82_vm2, %v1132_v18, %v106_v19  ;;  %v1139_v23 = vld [vmem:[%s2025_s0 + $0xa7] ss:$16 sm:%s161_s16]   ;;  %s185_s25 = smov 12  ;;  %s197_s26 = smov 3  ;;  %v159_v24 = vsel %vm72_vm0, %v1138_v22, %v1137_v20  ;;  %v1140_v25 = vld [vmem:[%s2025_s0 + $0x8f] ss:$16 sm:%s166_s19]  }
   0xa   :  { %112 = vrot.lane.b32.xlu0 %v111_v21, %s1275_s29  ;;  %s200_s30 = smov 12  ;;  %s205_s2 = smov 48  ;;  %v164_v26 = vsel %vm77_vm1, %v1139_v23, %v159_v24  ;;  %v1141_v27 = vld [vmem:[%s2025_s0 + $0x107] ss:$16 sm:%s182_s20]   ;;  %vm476_vm8 = vcmask 654848   ;;  %vm606_vm9 = vcmask 523648  }
   0xb   :  { %v1142_v28 = vld [vmem:[%s2025_s0 + $0xef] ss:$16 sm:%s185_s25]   ;;  %s210_s7 = smov 192  ;;  %v169_v29 = vsel %vm82_vm2, %v1140_v25, %v164_v26  ;;  %v1143_v31 = vld [vmem:[%s2025_s0 + $0x6] ss:$16 sm:%s197_s26]   ;;  %s225_s12 = smov 3 }
   0xc   :  { %v188_v30 = vsel %vm72_vm0, %v1142_v28, %v1141_v27  ;;  %v1144_v32 = vld [vmem:[%s2025_s0 - $0x12] ss:$16 sm:%s200_s30]   ;;  %s228_s13 = smov 12  ;;  %170 = vrot.lane.b32.xlu1 %v169_v29, %s1275_s29  ;;  %s233_s16 = smov 48  ;;  %vm736_vm10 = vcmask 392448   ;;  %vm866_vm11 = vcmask 261248  }
   0xd   :  { %v203_v33 = vsel %vm72_vm0, %v1144_v32, %v1143_v31  ;;  %v1145_v34 = vld [vmem:[%s2025_s0 - $0x1a] ss:$16 sm:%s205_s2]   ;;  %s238_s17 = smov 192  ;;  %v1146_v36 = vld [vmem:[%s2025_s0 - $0x32] ss:$16 sm:%s210_s7]   ;;  %s254_s19 = smov 3 }
   0xe   :  { %189 = vrot.lane.b32.xlu0 %v188_v30, %s1275_s29  ;;  %v208_v35 = vsel %vm77_vm1, %v1145_v34, %v203_v33  ;;  %v1147_v38 = vld [vmem:[%s2025_s0 + $0x46] ss:$16 sm:%s225_s12]   ;;  %s257_s24 = smov 12  ;;  %s262_s25 = smov 48 }
   0xf   :  { %v213_v37 = vsel %vm82_vm2, %v1146_v36, %v208_v35  ;;  %v1148_v39 = vld [vmem:[%s2025_s0 + $0x2e] ss:$16 sm:%s228_s13]   ;;  %v1149_v41 = vld [vmem:[%s2025_s0 + $0x26] ss:$16 sm:%s233_s16]   ;;  %s267_s2 = smov 192  ;;  %s1276_s3 = smov 96  }
  0x10   :  { %v231_v40 = vsel %vm72_vm0, %v1148_v39, %v1147_v38  ;;  %v1150_v42 = vld [vmem:[%s2025_s0 + $0xe] ss:$16 sm:%s238_s17]   ;;  %214 = vrot.lane.b32.xlu1 %v213_v37, %s1276_s3  ;;  %s283_s6 = smov 3  ;;  %s286_s7 = smov 12 }
  0x11   :  { %v236_v43 = vsel %vm77_vm1, %v1149_v41, %v231_v40  ;;  %v1151_v44 = vld [vmem:[%s2025_s0 + $0x86] ss:$16 sm:%s254_s19]   ;;  %v1152_v46 = vld [vmem:[%s2025_s0 + $0x6e] ss:$16 sm:%s257_s24]   ;;  %s291_s12 = smov 48  ;;  %s296_s13 = smov 192 }
  0x12   :  { %v241_v45 = vsel %vm82_vm2, %v1150_v42, %v236_v43  ;;  %v1153_v47 = vld [vmem:[%s2025_s0 + $0x66] ss:$16 sm:%s262_s25]   ;;  %v260_v48 = vsel %vm72_vm0, %v1152_v46, %v1151_v44  ;;  %v1154_v49 = vld [vmem:[%s2025_s0 + $0x4e] ss:$16 sm:%s267_s2]   ;;  %s312_s16 = smov 3  ;;  %s315_s20 = smov 12 }
  0x13   :  { %242 = vrot.lane.b32.xlu0 %v241_v45, %s1276_s3  ;;  %v265_v50 = vsel %vm77_vm1, %v1153_v47, %v260_v48  ;;  %v1155_v51 = vld [vmem:[%s2025_s0 + $0xc6] ss:$16 sm:%s283_s6]   ;;  %s327_s21 = smov 3  ;;  %s330_s26 = smov 12 }
  0x14   :  { %v1156_v52 = vld [vmem:[%s2025_s0 + $0xae] ss:$16 sm:%s286_s7]   ;;  %v270_v53 = vsel %vm82_vm2, %v1154_v49, %v265_v50  ;;  %v1157_v55 = vld [vmem:[%s2025_s0 + $0xa6] ss:$16 sm:%s291_s12]   ;;  %s335_s30 = smov 48  ;;  %s340_s2 = smov 192 }
  0x15   :  { %v289_v54 = vsel %vm72_vm0, %v1156_v52, %v1155_v51  ;;  %v1158_v56 = vld [vmem:[%s2025_s0 + $0x8e] ss:$16 sm:%s296_s13]   ;;  %271 = vrot.lane.b32.xlu1 %v270_v53, %s1276_s3  ;;  %s355_s8 = smov 3  ;;  %s358_s11 = smov 12 }
  0x16   :  { %v294_v57 = vsel %vm77_vm1, %v1157_v55, %v289_v54  ;;  %v1159_v58 = vld [vmem:[%s2025_s0 + $0x106] ss:$16 sm:%s312_s16]   ;;  %v1160_v60 = vld [vmem:[%s2025_s0 + $0xee] ss:$16 sm:%s315_s20]   ;;  %s363_s12 = smov 48  ;;  %s368_s17 = smov 192 }
  0x17   :  { %v299_v59 = vsel %vm82_vm2, %v1158_v56, %v294_v57  ;;  %v1161_v61 = vld [vmem:[%s2025_s0 + $0x5] ss:$16 sm:%s327_s21]   ;;  %v318_v62 = vsel %vm72_vm0, %v1160_v60, %v1159_v58  ;;  %v1162_v63 = vld [vmem:[%s2025_s0 - $0x13] ss:$16 sm:%s330_s26]   ;;  %s384_s18 = smov 3  ;;  %s387_s19 = smov 12 }
  0x18   :  { %300 = vrot.lane.b32.xlu0 %v299_v59, %s1276_s3  ;;  %v333_v0 = vsel %vm72_vm0, %v1162_v63, %v1161_v61  ;;  %v1163_v1 = vld [vmem:[%s2025_s0 - $0x1b] ss:$16 sm:%s335_s30]   ;;  %s392_s24 = smov 48  ;;  %s397_s25 = smov 192 }
  0x19   :  { %v1164_v2 = vld [vmem:[%s2025_s0 - $0x33] ss:$16 sm:%s340_s2]   ;;  %319 = vrot.lane.b32.xlu1 %v318_v62, %s1276_s3  ;;  %v338_v3 = vsel %vm77_vm1, %v1163_v1, %v333_v0  ;;  %s1277_s26 = smov 80   ;;  %s413_s30 = smov 3 }
  0x1a   :  { %v1165_v4 = vld [vmem:[%s2025_s0 + $0x45] ss:$16 sm:%s355_s8]   ;;  %v343_v5 = vsel %vm82_vm2, %v1164_v2, %v338_v3  ;;  %v1166_v6 = vld [vmem:[%s2025_s0 + $0x2d] ss:$16 sm:%s358_s11]   ;;  %s416_s7 = smov 12  ;;  %s421_s8 = smov 48 }
  0x1b   :  { %v1167_v7 = vld [vmem:[%s2025_s0 + $0x25] ss:$16 sm:%s363_s12]   ;;  %v361_v8 = vsel %vm72_vm0, %v1166_v6, %v1165_v4  ;;  %v1168_v9 = vld [vmem:[%s2025_s0 + $0xd] ss:$16 sm:%s368_s17]   ;;  %s426_s13 = smov 192  ;;  %s442_s16 = smov 3 }
  0x1c   :  { %344 = vrot.lane.b32.xlu0 %v343_v5, %s1277_s26  ;;  %v366_v10 = vsel %vm77_vm1, %v1167_v7, %v361_v8  ;;  %v1169_v11 = vld [vmem:[%s2025_s0 + $0x85] ss:$16 sm:%s384_s18]   ;;  %s445_s17 = smov 12  ;;  %s457_s20 = smov 3 }
  0x1d   :  { %v1170_v12 = vld [vmem:[%s2025_s0 + $0x6d] ss:$16 sm:%s387_s19]   ;;  %v371_v13 = vsel %vm82_vm2, %v1168_v9, %v366_v10  ;;  %v1171_v15 = vld [vmem:[%s2025_s0 + $0x65] ss:$16 sm:%s392_s24]   ;;  %s460_s21 = smov 12  ;;  %s465_s24 = smov 48 }
  0x1e   :  { %v390_v14 = vsel %vm72_vm0, %v1170_v12, %v1169_v11  ;;  %v1172_v16 = vld [vmem:[%s2025_s0 + $0x4d] ss:$16 sm:%s397_s25]   ;;  %372 = vrot.lane.b32.xlu1 %v371_v13, %s1277_s26  ;;  %s470_s2 = smov 192  ;;  %s488_s9 = smov 12 }
  0x1f   :  { %v395_v17 = vsel %vm77_vm1, %v1171_v15, %v390_v14  ;;  %v1173_v18 = vld [vmem:[%s2025_s0 + $0xc5] ss:$16 sm:%s413_s30]   ;;  %v1174_v20 = vld [vmem:[%s2025_s0 + $0xad] ss:$16 sm:%s416_s7]   ;;  %s493_s12 = smov 48  ;;  %s514_s15 = smov 3 }
  0x20   :  { %v400_v19 = vsel %vm82_vm2, %v1172_v16, %v395_v17  ;;  %v1175_v21 = vld [vmem:[%s2025_s0 + $0xa5] ss:$16 sm:%s421_s8]   ;;  %v419_v22 = vsel %vm72_vm0, %v1174_v20, %v1173_v18  ;;  %v1176_v23 = vld [vmem:[%s2025_s0 + $0x8d] ss:$16 sm:%s426_s13]   ;;  %s485_s8 = smov 3  ;;  %s498_s13 = smov 192 }
  0x21   :  { %401 = vrot.lane.b32.xlu0 %v400_v19, %s1277_s26  ;;  %v424_v24 = vsel %vm77_vm1, %v1175_v21, %v419_v22  ;;  %v1177_v25 = vld [vmem:[%s2025_s0 + $0x105] ss:$16 sm:%s442_s16]   ;;  %s517_s18 = smov 12  ;;  %s522_s19 = smov 48 }
  0x22   :  { %v1178_v26 = vld [vmem:[%s2025_s0 + $0xed] ss:$16 sm:%s445_s17]   ;;  %v429_v27 = vsel %vm82_vm2, %v1176_v23, %v424_v24  ;;  %v1179_v29 = vld [vmem:[%s2025_s0 + $0x4] ss:$16 sm:%s457_s20]   ;;  %s1278_s25 = smov 64   ;;  %s543_s30 = smov 3 }
  0x23   :  { %v448_v28 = vsel %vm72_vm0, %v1178_v26, %v1177_v25  ;;  %v1180_v30 = vld [vmem:[%s2025_s0 - $0x14] ss:$16 sm:%s460_s21]   ;;  %430 = vrot.lane.b32.xlu1 %v429_v27, %s1277_s26  ;;  %s575_s16 = smov 12  ;;  %s587_s17 = smov 3 }
  0x24   :  { %v463_v31 = vsel %vm72_vm0, %v1180_v30, %v1179_v29  ;;  %v1181_v32 = vld [vmem:[%s2025_s0 - $0x1c] ss:$16 sm:%s465_s24]   ;;  %v1182_v34 = vld [vmem:[%s2025_s0 - $0x34] ss:$16 sm:%s470_s2]   ;;  %s527_s24 = smov 192  ;;  %s546_s2 = smov 12 }
  0x25   :  { %449 = vrot.lane.b32.xlu0 %v448_v28, %s1277_s26  ;;  %v468_v33 = vsel %vm77_vm1, %v1181_v32, %v463_v31  ;;  %v1183_v36 = vld [vmem:[%s2025_s0 + $0x44] ss:$16 sm:%s485_s8]   ;;  %s551_s8 = smov 48  ;;  %s590_s20 = smov 12 }
  0x26   :  { %v473_v35 = vsel %vm82_vm2, %v1182_v34, %v468_v33  ;;  %v1184_v37 = vld [vmem:[%s2025_s0 + $0x2c] ss:$16 sm:%s488_s9]   ;;  %v1185_v39 = vld [vmem:[%s2025_s0 + $0x24] ss:$16 sm:%s493_s12]   ;;  %s556_s9 = smov 192  ;;  %s572_s12 = smov 3 }
  0x27   :  { %v491_v38 = vsel %vm72_vm0, %v1184_v37, %v1183_v36  ;;  %v1186_v40 = vld [vmem:[%s2025_s0 + $0xc] ss:$16 sm:%s498_s13]   ;;  %474 = vrot.lane.b32.xlu1 %v473_v35, %s1278_s25  ;;  %s595_s23 = smov 48  ;;  %s615_s4 = smov 3 }
  0x28   :  { %v496_v41 = vsel %vm77_vm1, %v1185_v39, %v491_v38  ;;  %v1187_v42 = vld [vmem:[%s2025_s0 + $0x84] ss:$16 sm:%s514_s15]   ;;  %v1188_v44 = vld [vmem:[%s2025_s0 + $0x6c] ss:$16 sm:%s517_s18]   ;;  %s618_s7 = smov 12  ;;  %s628_s13 = smov 192 }
  0x29   :  { %v501_v43 = vsel %vm82_vm2, %v1186_v40, %v496_v41  ;;  %v1189_v45 = vld [vmem:[%s2025_s0 + $0x64] ss:$16 sm:%s522_s19]   ;;  %v520_v46 = vsel %vm72_vm0, %v1188_v44, %v1187_v42  ;;  %v1190_v47 = vld [vmem:[%s2025_s0 + $0x4c] ss:$16 sm:%s527_s24]   ;;  %s600_s24 = smov 192  ;;  %s644_s14 = smov 3 }
  0x2a   :  { %502 = vrot.lane.b32.xlu0 %v501_v43, %s1278_s25  ;;  %v525_v48 = vsel %vm77_vm1, %v1189_v45, %v520_v46  ;;  %v1191_v49 = vld [vmem:[%s2025_s0 + $0xc4] ss:$16 sm:%s543_s30]   ;;  %s647_s15 = smov 12  ;;  %s652_s18 = smov 48 }
  0x2b   :  { %v1192_v50 = vld [vmem:[%s2025_s0 + $0xac] ss:$16 sm:%s546_s2]   ;;  %v530_v51 = vsel %vm82_vm2, %v1190_v47, %v525_v48  ;;  %v1193_v53 = vld [vmem:[%s2025_s0 + $0xa4] ss:$16 sm:%s551_s8]   ;;  %s623_s8 = smov 48  ;;  %s657_s19 = smov 192 }
  0x2c   :  { %v549_v52 = vsel %vm72_vm0, %v1192_v50, %v1191_v49  ;;  %v1194_v54 = vld [vmem:[%s2025_s0 + $0x8c] ss:$16 sm:%s556_s9]   ;;  %531 = vrot.lane.b32.xlu1 %v530_v51, %s1278_s25  ;;  %s676_s2 = smov 12  ;;  %s686_s9 = smov 192 }
  0x2d   :  { %v554_v55 = vsel %vm77_vm1, %v1193_v53, %v549_v52  ;;  %v1195_v56 = vld [vmem:[%s2025_s0 + $0x104] ss:$16 sm:%s572_s12]   ;;  %v1196_v58 = vld [vmem:[%s2025_s0 + $0xec] ss:$16 sm:%s575_s16]   ;;  %s702_s12 = smov 3  ;;  %s717_s16 = smov 3 }
  0x2e   :  { %v559_v57 = vsel %vm82_vm2, %v1194_v54, %v554_v55  ;;  %v1197_v59 = vld [vmem:[%s2025_s0 + $0x3] ss:$16 sm:%s587_s17]   ;;  %v578_v60 = vsel %vm72_vm0, %v1196_v58, %v1195_v56  ;;  %v1198_v61 = vld [vmem:[%s2025_s0 - $0x15] ss:$16 sm:%s590_s20]   ;;  %s1279_s20 = smov 48   ;;  %s720_s17 = smov 12 }
  0x2f   :  { %560 = vrot.lane.b32.xlu0 %v559_v57, %s1278_s25  ;;  %v593_v62 = vsel %vm72_vm0, %v1198_v61, %v1197_v59  ;;  %v1199_v63 = vld [vmem:[%s2025_s0 - $0x1d] ss:$16 sm:%s595_s23]   ;;  %s673_s23 = smov 3  ;;  %s748_s5 = smov 12 }
  0x30   :  { %v1200_v0 = vld [vmem:[%s2025_s0 - $0x35] ss:$16 sm:%s600_s24]   ;;  %579 = vrot.lane.b32.xlu1 %v578_v60, %s1278_s25  ;;  %v598_v1 = vsel %vm77_vm1, %v1199_v63, %v593_v62  ;;  %s730_s24 = smov 192  ;;  %s774_s11 = smov 3 }
  0x31   :  { %v1201_v2 = vld [vmem:[%s2025_s0 + $0x43] ss:$16 sm:%s615_s4]   ;;  %v603_v3 = vsel %vm82_vm2, %v1200_v0, %v598_v1  ;;  %v1202_v4 = vld [vmem:[%s2025_s0 + $0x2b] ss:$16 sm:%s618_s7]   ;;  %s681_s4 = smov 48  ;;  %s850_s25 = smov 12 }
  0x32   :  { %v1203_v5 = vld [vmem:[%s2025_s0 + $0x23] ss:$16 sm:%s623_s8]   ;;  %v621_v6 = vsel %vm72_vm0, %v1202_v4, %v1201_v2  ;;  %v1204_v7 = vld [vmem:[%s2025_s0 + $0xb] ss:$16 sm:%s628_s13]   ;;  %s705_s13 = smov 12  ;;  %s753_s8 = smov 48 }
  0x33   :  { %604 = vrot.lane.b32.xlu0 %v603_v3, %s1279_s20  ;;  %v626_v8 = vsel %vm77_vm1, %v1203_v5, %v621_v6  ;;  %v1205_v9 = vld [vmem:[%s2025_s0 + $0x83] ss:$16 sm:%s644_s14]   ;;  %s777_s14 = smov 12  ;;  %s860_s3 = smov 192 }
  0x34   :  { %v1206_v10 = vld [vmem:[%s2025_s0 + $0x6b] ss:$16 sm:%s647_s15]   ;;  %v631_v11 = vsel %vm82_vm2, %v1204_v7, %v626_v8  ;;  %v1207_v13 = vld [vmem:[%s2025_s0 + $0x63] ss:$16 sm:%s652_s18]   ;;  %s725_s18 = smov 48  ;;  %s782_s15 = smov 48 }
  0x35   :  { %v650_v12 = vsel %vm72_vm0, %v1206_v10, %v1205_v9  ;;  %v1208_v14 = vld [vmem:[%s2025_s0 + $0x4b] ss:$16 sm:%s657_s19]   ;;  %632 = vrot.lane.b32.xlu1 %v631_v11, %s1279_s20  ;;  %s1280_s19 = smov 32   ;;  %v2_v55 = vld [vmem:[%s2025_s0] ss:$8 sm:$0xf]  }
  0x36   :  { %v655_v15 = vsel %vm77_vm1, %v1207_v13, %v650_v12  ;;  %v1209_v16 = vld [vmem:[%s2025_s0 + $0xc3] ss:$16 sm:%s673_s23]   ;;  %v1210_v18 = vld [vmem:[%s2025_s0 + $0xab] ss:$16 sm:%s676_s2]   ;;  %s803_s23 = smov 3  ;;  %s875_s30 = smov 3 }
  0x37   :  { %v660_v17 = vsel %vm82_vm2, %v1208_v14, %v655_v15  ;;  %v1211_v19 = vld [vmem:[%s2025_s0 + $0xa3] ss:$16 sm:%s681_s4]   ;;  %v679_v20 = vsel %vm72_vm0, %v1210_v18, %v1209_v16  ;;  %v1212_v21 = vld [vmem:[%s2025_s0 + $0x8b] ss:$16 sm:%s686_s9]   ;;  %s745_s4 = smov 3  ;;  %s758_s9 = smov 192 }
  0x38   :  { %661 = vrot.lane.b32.xlu0 %v660_v17, %s1279_s20  ;;  %v684_v22 = vsel %vm77_vm1, %v1211_v19, %v679_v20  ;;  %v1213_v23 = vld [vmem:[%s2025_s0 + $0x103] ss:$16 sm:%s702_s12]   ;;  %s878_s2 = smov 12  ;;  %s883_s6 = smov 48 }
  0x39   :  { %v1214_v24 = vld [vmem:[%s2025_s0 + $0xeb] ss:$16 sm:%s705_s13]   ;;  %v689_v25 = vsel %vm82_vm2, %v1212_v21, %v684_v22  ;;  %v1215_v27 = vld [vmem:[%s2025_s0 + $0x2] ss:$16 sm:%s717_s16]   ;;  %s847_s13 = smov 3  ;;  %s888_s12 = smov 192 }
  0x3a   :  { %v708_v26 = vsel %vm72_vm0, %v1214_v24, %v1213_v23  ;;  %v1216_v28 = vld [vmem:[%s2025_s0 - $0x16] ss:$16 sm:%s720_s17]   ;;  %690 = vrot.lane.b32.xlu1 %v689_v25, %s1279_s20  ;;  %s855_s17 = smov 48  ;;  %v3_v61 = vld [vmem:[%s2025_s0] ss:$8 sm:$0xf0]  }
  0x3b   :  { %v723_v29 = vsel %vm72_vm0, %v1216_v28, %v1215_v27  ;;  %v1217_v30 = vld [vmem:[%s2025_s0 - $0x1e] ss:$16 sm:%s725_s18]   ;;  %v1218_v32 = vld [vmem:[%s2025_s0 - $0x36] ss:$16 sm:%s730_s24]   ;;  %s787_s18 = smov 192  ;;  %s806_s24 = smov 12  ;;  %v5_v1 = vsel %vm4_vm3, %v3_v61, %v2_v55 }
  0x3c   :  { %709 = vrot.lane.b32.xlu0 %v708_v26, %s1279_s20  ;;  %v728_v31 = vsel %vm77_vm1, %v1217_v30, %v723_v29  ;;  %v1219_v34 = vld [vmem:[%s2025_s0 + $0x42] ss:$16 sm:%s745_s4]   ;;  %s811_s4 = smov 48  ;;  %s907_s26 = smov 12 }
  0x3d   :  { %v733_v33 = vsel %vm82_vm2, %v1218_v32, %v728_v31  ;;  %v1220_v35 = vld [vmem:[%s2025_s0 + $0x2a] ss:$16 sm:%s748_s5]   ;;  %v1221_v37 = vld [vmem:[%s2025_s0 + $0x22] ss:$16 sm:%s753_s8]   ;;  %s816_s5 = smov 192  ;;  %s832_s8 = smov 3 }
  0x3e   :  { %v751_v36 = vsel %vm72_vm0, %v1220_v35, %v1219_v34  ;;  %v1222_v38 = vld [vmem:[%s2025_s0 + $0xa] ss:$16 sm:%s758_s9]   ;;  %734 = vrot.lane.b32.xlu1 %v733_v33, %s1280_s19  ;;  %s835_s9 = smov 12  ;;  %7 = vst.msk [vmem:[#allocation0] ss:$8 sm:$0x3] %vm6_vm4, %v5_v1  }
  0x3f   :  { %v756_v39 = vsel %vm77_vm1, %v1221_v37, %v751_v36  ;;  %v1223_v40 = vld [vmem:[%s2025_s0 + $0x82] ss:$16 sm:%s774_s11]   ;;  %v1224_v42 = vld [vmem:[%s2025_s0 + $0x6a] ss:$16 sm:%s777_s14]   ;;  %s917_s21 = smov 192  ;;  %s1281_s22 = smov 16  }
  0x40   :  { %v761_v41 = vsel %vm82_vm2, %v1222_v38, %v756_v39  ;;  %v1225_v43 = vld [vmem:[%s2025_s0 + $0x62] ss:$16 sm:%s782_s15]   ;;  %v780_v44 = vsel %vm72_vm0, %v1224_v42, %v1223_v40  ;;  %v1226_v45 = vld [vmem:[%s2025_s0 + $0x4a] ss:$16 sm:%s787_s18]   ;;  %s912_s18 = smov 48  ;;  %s933_s27 = smov 3 }
  0x41   :  { %762 = vrot.lane.b32.xlu0 %v761_v41, %s1280_s19  ;;  %v785_v46 = vsel %vm77_vm1, %v1225_v43, %v780_v44  ;;  %v1227_v47 = vld [vmem:[%s2025_s0 + $0xc2] ss:$16 sm:%s803_s23]   ;;  %9 = vst.msk [vmem:[#allocation0 - $0xf] ss:$8 sm:$0xc] %vm6_vm4, %v5_v1   ;;  %s936_s7 = smov 12 }
  0x42   :  { %v1228_v48 = vld [vmem:[%s2025_s0 + $0xaa] ss:$16 sm:%s806_s24]   ;;  %v790_v49 = vsel %vm82_vm2, %v1226_v45, %v785_v46  ;;  %v1229_v51 = vld [vmem:[%s2025_s0 + $0xa2] ss:$16 sm:%s811_s4]  }
  0x43   :  { %v809_v50 = vsel %vm72_vm0, %v1228_v48, %v1227_v47  ;;  %v1230_v52 = vld [vmem:[%s2025_s0 + $0x8a] ss:$16 sm:%s816_s5]   ;;  %791 = vrot.lane.b32.xlu1 %v790_v49, %s1280_s19  ;;  %11 = vst.msk [vmem:[#allocation0 - $0x10] ss:$8 sm:$0x30] %vm6_vm4, %v5_v1  }
  0x44   :  { %v814_v53 = vsel %vm77_vm1, %v1229_v51, %v809_v50  ;;  %v1231_v54 = vld [vmem:[%s2025_s0 + $0x102] ss:$16 sm:%s832_s8]   ;;  %v1232_v57 = vld [vmem:[%s2025_s0 + $0xea] ss:$16 sm:%s835_s9]   ;;  %s941_s8 = smov 48 }
  0x45   :  { %v819_v56 = vsel %vm82_vm2, %v1230_v52, %v814_v53  ;;  %v1233_v58 = vld [vmem:[%s2025_s0 + $0x1] ss:$16 sm:%s847_s13]   ;;  %v838_v59 = vsel %vm72_vm0, %v1232_v57, %v1231_v54  ;;  %v1234_v60 = vld [vmem:[%s2025_s0 - $0x17] ss:$16 sm:%s850_s25]   ;;  %s904_s13 = smov 3 }
  0x46   :  { %820 = vrot.lane.b32.xlu0 %v819_v56, %s1280_s19  ;;  %v853_v62 = vsel %vm72_vm0, %v1234_v60, %v1233_v58  ;;  %v1235_v63 = vld [vmem:[%s2025_s0 - $0x1f] ss:$16 sm:%s855_s17]   ;;  %13 = vst.msk [vmem:[#allocation0 - $0x1f] ss:$8 sm:$0xc0] %vm6_vm4, %v5_v1  }
  0x47   :  { %v1236_v0 = vld [vmem:[%s2025_s0 - $0x37] ss:$16 sm:%s860_s3]   ;;  %839 = vrot.lane.b32.xlu1 %v838_v59, %s1280_s19  ;;  %v858_v2 = vsel %vm77_vm1, %v1235_v63, %v853_v62  ;;  %v1120_v4 = vld [vmem:[%s2025_s0 + $0x80] ss:$8 sm:$0xf]  }
  0x48   :  { %v1237_v3 = vld [vmem:[%s2025_s0 + $0x41] ss:$16 sm:%s875_s30]   ;;  %v863_v5 = vsel %vm82_vm2, %v1236_v0, %v858_v2  ;;  %v1238_v6 = vld [vmem:[%s2025_s0 + $0x29] ss:$16 sm:%s878_s2]  }
  0x49   :  { %v1239_v7 = vld [vmem:[%s2025_s0 + $0x21] ss:$16 sm:%s883_s6]   ;;  %v881_v8 = vsel %vm72_vm0, %v1238_v6, %v1237_v3  ;;  %v1240_v9 = vld [vmem:[%s2025_s0 + $0x9] ss:$16 sm:%s888_s12]   ;;  %s946_s12 = smov 192 }
  0x4a   :  { %864 = vrot.lane.b32.xlu0 %v863_v5, %s1281_s22  ;;  %v1121_v10 = vld [vmem:[%s2025_s0 + $0x80] ss:$8 sm:$0xf0]   ;;  %v886_v11 = vsel %vm77_vm1, %v1239_v7, %v881_v8  ;;  %v1241_v12 = vld [vmem:[%s2025_s0 + $0x81] ss:$16 sm:%s904_s13]   ;;  %s962_s13 = smov 3 }
  0x4b   :  { %v1242_v13 = vld [vmem:[%s2025_s0 + $0x69] ss:$16 sm:%s907_s26]   ;;  %v34_v14 = vsel %vm4_vm3, %v1121_v10, %v1120_v4  ;;  %v891_v15 = vsel %vm82_vm2, %v1240_v9, %v886_v11  ;;  %v1243_v17 = vld [vmem:[%s2025_s0 + $0x61] ss:$16 sm:%s912_s18]   ;;  %s965_s26 = smov 12 }
  0x4c   :  { %v910_v16 = vsel %vm72_vm0, %v1242_v13, %v1241_v12  ;;  %v1244_v18 = vld [vmem:[%s2025_s0 + $0x49] ss:$16 sm:%s917_s21]   ;;  %37 = vst.msk [vmem:[#allocation0 + $0x40] ss:$8 sm:$0x3] %vm6_vm4, %v34_v14   ;;  %892 = vrot.lane.b32.xlu1 %v891_v15, %s1281_s22 }
  0x4d   :  { %39 = vst.msk [vmem:[#allocation0 + $0x31] ss:$8 sm:$0xc] %vm6_vm4, %v34_v14   ;;  %41 = vst.msk [vmem:[#allocation0 + $0x30] ss:$8 sm:$0x30] %vm6_vm4, %v34_v14   ;;  %v915_v19 = vsel %vm77_vm1, %v1243_v17, %v910_v16 }
  0x4e   :  { %43 = vst.msk [vmem:[#allocation0 + $0x21] ss:$8 sm:$0xc0] %vm6_vm4, %v34_v14   ;;  %v1245_v20 = vld [vmem:[%s2025_s0 + $0xc1] ss:$16 sm:%s933_s27]   ;;  %v920_v22 = vsel %vm82_vm2, %v1244_v18, %v915_v19 }
  0x4f   :  { %v1118_v21 = vld [vmem:[%s2025_s0 + $0x40] ss:$8 sm:$0xf]   ;;  %v1246_v23 = vld [vmem:[%s2025_s0 + $0xa9] ss:$16 sm:%s936_s7]   ;;  %921 = vrot.lane.b32.xlu0 %v920_v22, %s1281_s22 }
  0x50   :  { %v1247_v24 = vld [vmem:[%s2025_s0 + $0xa1] ss:$16 sm:%s941_s8]   ;;  %v939_v25 = vsel %vm72_vm0, %v1246_v23, %v1245_v20  ;;  %v1248_v26 = vld [vmem:[%s2025_s0 + $0x89] ss:$16 sm:%s946_s12]  }
  0x51   :  { %v1119_v27 = vld [vmem:[%s2025_s0 + $0x40] ss:$8 sm:$0xf0]   ;;  %v944_v28 = vsel %vm77_vm1, %v1247_v24, %v939_v25  ;;  %v1249_v29 = vld [vmem:[%s2025_s0 + $0x101] ss:$16 sm:%s962_s13]  }
  0x52   :  { %v1250_v30 = vld [vmem:[%s2025_s0 + $0xe9] ss:$16 sm:%s965_s26]   ;;  %v19_v31 = vsel %vm4_vm3, %v1119_v27, %v1118_v21  ;;  %v949_v32 = vsel %vm82_vm2, %v1248_v26, %v944_v28  ;;  %v1122_v34 = vld [vmem:[%s2025_s0 + $0xc0] ss:$8 sm:$0xf]  }
  0x53   :  { %v968_v33 = vsel %vm72_vm0, %v1250_v30, %v1249_v29  ;;  %22 = vst.msk [vmem:[#allocation0 + $0x20] ss:$8 sm:$0x3] %vm6_vm4, %v19_v31   ;;  %24 = vst.msk [vmem:[#allocation0 + $0x11] ss:$8 sm:$0xc] %vm6_vm4, %v19_v31   ;;  %950 = vrot.lane.b32.xlu1 %v949_v32, %s1281_s22 }
  0x54   :  { %26 = vst.msk [vmem:[#allocation0 + $0x10] ss:$8 sm:$0x30] %vm6_vm4, %v19_v31   ;;  %28 = vst.msk [vmem:[#allocation0 + $0x1] ss:$8 sm:$0xc0] %vm6_vm4, %v19_v31   ;;  %969 = vrot.lane.b32.xlu0 %v968_v33, %s1281_s22 }
  0x55   :  { %v1123_v35 = vld [vmem:[%s2025_s0 + $0xc0] ss:$8 sm:$0xf0]  }
  0x56   :  { %v49_v36 = vsel %vm4_vm3, %v1123_v35, %v1122_v34  ;;  %v1124_v37 = vld [vmem:[%s2025_s0 + $0x100] ss:$8 sm:$0xf]  }
  0x57   :  { %52 = vst.msk [vmem:[#allocation0 + $0x60] ss:$8 sm:$0x3] %vm6_vm4, %v49_v36   ;;  %54 = vst.msk [vmem:[#allocation0 + $0x51] ss:$8 sm:$0xc] %vm6_vm4, %v49_v36  }
  0x58   :  { %56 = vst.msk [vmem:[#allocation0 + $0x50] ss:$8 sm:$0x30] %vm6_vm4, %v49_v36   ;;  %58 = vst.msk [vmem:[#allocation0 + $0x41] ss:$8 sm:$0xc0] %vm6_vm4, %v49_v36  }
  0x59   :  { %63 = vst.msk [vmem:[#allocation0 + $0x80] ss:$8 sm:$0x3] %vm6_vm4, %v1124_v37   ;;  %65 = vst.msk [vmem:[#allocation0 + $0x71] ss:$8 sm:$0xc] %vm6_vm4, %v1124_v37  }
  0x77   :  { %v85_v38 = vpop.permute.xlu0 %84  }
  0x78   :  { %87 = vst.msk [vmem:[#allocation0] sm:$0x3] %vm86_vm5, %v85_v38   ;;  %89 = vst.msk [vmem:[#allocation0 + $0x6] sm:$0xc] %vm86_vm5, %v85_v38  }
  0x79   :  { %91 = vst.msk [vmem:[#allocation0 + $0xc] sm:$0x30] %vm86_vm5, %v85_v38   ;;  %93 = vst.msk [vmem:[#allocation0 + $0x12] sm:$0xc0] %vm86_vm5, %v85_v38   ;;  %v142_v39 = vpop.permute.xlu1 %141  }
  0x7a   :  { %145 = vst.msk [vmem:[#allocation0 + $0x40] sm:$0x3] %vm86_vm5, %v142_v39   ;;  %147 = vst.msk [vmem:[#allocation0 + $0x46] sm:$0xc] %vm86_vm5, %v142_v39  }
  0x7b   :  { %149 = vst.msk [vmem:[#allocation0 + $0x4c] sm:$0x30] %vm86_vm5, %v142_v39   ;;  %151 = vst.msk [vmem:[#allocation0 + $0x52] sm:$0xc0] %vm86_vm5, %v142_v39  }
  0x7c   :  { %v113_v40 = vpop.permute.xlu0 %112  }
  0x7d   :  { %116 = vst.msk [vmem:[#allocation0 + $0x20] sm:$0x3] %vm86_vm5, %v113_v40   ;;  %118 = vst.msk [vmem:[#allocation0 + $0x26] sm:$0xc] %vm86_vm5, %v113_v40  }
  0x7e   :  { %120 = vst.msk [vmem:[#allocation0 + $0x2c] sm:$0x30] %vm86_vm5, %v113_v40   ;;  %122 = vst.msk [vmem:[#allocation0 + $0x32] sm:$0xc0] %vm86_vm5, %v113_v40   ;;  %v171_v41 = vpop.permute.xlu1 %170  }
  0x7f   :  { %174 = vst.msk [vmem:[#allocation0 + $0x60] sm:$0x3] %vm86_vm5, %v171_v41   ;;  %176 = vst.msk [vmem:[#allocation0 + $0x66] sm:$0xc] %vm86_vm5, %v171_v41  }
  0x80   :  { %178 = vst.msk [vmem:[#allocation0 + $0x6c] sm:$0x30] %vm86_vm5, %v171_v41   ;;  %180 = vst.msk [vmem:[#allocation0 + $0x72] sm:$0xc0] %vm86_vm5, %v171_v41   ;;  %v190_v42 = vpop.permute.xlu0 %189  }
  0x81   :  { %193 = vst.msk [vmem:[#allocation0 + $0x80] sm:$0x3] %vm86_vm5, %v190_v42   ;;  %195 = vst.msk [vmem:[#allocation0 + $0x86] sm:$0xc] %vm86_vm5, %v190_v42  }
  0x82   :  { %v215_v43 = vpop.permute.xlu1 %214  }
  0x83   :  { %217 = vst.msk [vmem:[#allocation0] sm:$0x3] %vm216_vm6, %v215_v43   ;;  %219 = vst.msk [vmem:[#allocation0 + $0x6] sm:$0xc] %vm216_vm6, %v215_v43  }
  0x84   :  { %221 = vst.msk [vmem:[#allocation0 + $0xc] sm:$0x30] %vm216_vm6, %v215_v43   ;;  %223 = vst.msk [vmem:[#allocation0 + $0x12] sm:$0xc0] %vm216_vm6, %v215_v43  }
  0x85   :  { %v243_v44 = vpop.permute.xlu0 %242  }
  0x86   :  { %246 = vst.msk [vmem:[#allocation0 + $0x20] sm:$0x3] %vm216_vm6, %v243_v44   ;;  %248 = vst.msk [vmem:[#allocation0 + $0x26] sm:$0xc] %vm216_vm6, %v243_v44  }
  0x87   :  { %250 = vst.msk [vmem:[#allocation0 + $0x2c] sm:$0x30] %vm216_vm6, %v243_v44   ;;  %252 = vst.msk [vmem:[#allocation0 + $0x32] sm:$0xc0] %vm216_vm6, %v243_v44   ;;  %v272_v45 = vpop.permute.xlu1 %271  }
  0x88   :  { %275 = vst.msk [vmem:[#allocation0 + $0x40] sm:$0x3] %vm216_vm6, %v272_v45   ;;  %277 = vst.msk [vmem:[#allocation0 + $0x46] sm:$0xc] %vm216_vm6, %v272_v45  }
  0x89   :  { %279 = vst.msk [vmem:[#allocation0 + $0x4c] sm:$0x30] %vm216_vm6, %v272_v45   ;;  %281 = vst.msk [vmem:[#allocation0 + $0x52] sm:$0xc0] %vm216_vm6, %v272_v45  }
  0x8a   :  { %v301_v46 = vpop.permute.xlu0 %300  }
  0x8b   :  { %304 = vst.msk [vmem:[#allocation0 + $0x60] sm:$0x3] %vm216_vm6, %v301_v46   ;;  %306 = vst.msk [vmem:[#allocation0 + $0x66] sm:$0xc] %vm216_vm6, %v301_v46   ;;  %v320_v47 = vpop.permute.xlu1 %319  }
  0x8c   :  { %308 = vst.msk [vmem:[#allocation0 + $0x6c] sm:$0x30] %vm216_vm6, %v301_v46   ;;  %310 = vst.msk [vmem:[#allocation0 + $0x72] sm:$0xc0] %vm216_vm6, %v301_v46  }
  0x8d   :  { %323 = vst.msk [vmem:[#allocation0 + $0x80] sm:$0x3] %vm216_vm6, %v320_v47   ;;  %325 = vst.msk [vmem:[#allocation0 + $0x86] sm:$0xc] %vm216_vm6, %v320_v47  }
  0x8e   :  { %v345_v48 = vpop.permute.xlu0 %344  }
  0x8f   :  { %347 = vst.msk [vmem:[#allocation0] sm:$0x3] %vm346_vm7, %v345_v48   ;;  %349 = vst.msk [vmem:[#allocation0 + $0x6] sm:$0xc] %vm346_vm7, %v345_v48  }
  0x90   :  { %351 = vst.msk [vmem:[#allocation0 + $0xc] sm:$0x30] %vm346_vm7, %v345_v48   ;;  %353 = vst.msk [vmem:[#allocation0 + $0x12] sm:$0xc0] %vm346_vm7, %v345_v48   ;;  %v373_v49 = vpop.permute.xlu1 %372  }
  0x91   :  { %376 = vst.msk [vmem:[#allocation0 + $0x20] sm:$0x3] %vm346_vm7, %v373_v49   ;;  %378 = vst.msk [vmem:[#allocation0 + $0x26] sm:$0xc] %vm346_vm7, %v373_v49  }
  0x92   :  { %380 = vst.msk [vmem:[#allocation0 + $0x2c] sm:$0x30] %vm346_vm7, %v373_v49   ;;  %382 = vst.msk [vmem:[#allocation0 + $0x32] sm:$0xc0] %vm346_vm7, %v373_v49  }
  0x93   :  { %v402_v50 = vpop.permute.xlu0 %401  }
  0x94   :  { %405 = vst.msk [vmem:[#allocation0 + $0x40] sm:$0x3] %vm346_vm7, %v402_v50   ;;  %407 = vst.msk [vmem:[#allocation0 + $0x46] sm:$0xc] %vm346_vm7, %v402_v50  }
  0x95   :  { %409 = vst.msk [vmem:[#allocation0 + $0x4c] sm:$0x30] %vm346_vm7, %v402_v50   ;;  %411 = vst.msk [vmem:[#allocation0 + $0x52] sm:$0xc0] %vm346_vm7, %v402_v50   ;;  %v431_v51 = vpop.permute.xlu1 %430  }
  0x96   :  { %434 = vst.msk [vmem:[#allocation0 + $0x60] sm:$0x3] %vm346_vm7, %v431_v51   ;;  %436 = vst.msk [vmem:[#allocation0 + $0x66] sm:$0xc] %vm346_vm7, %v431_v51  }
  0x97   :  { %438 = vst.msk [vmem:[#allocation0 + $0x6c] sm:$0x30] %vm346_vm7, %v431_v51   ;;  %440 = vst.msk [vmem:[#allocation0 + $0x72] sm:$0xc0] %vm346_vm7, %v431_v51   ;;  %v450_v52 = vpop.permute.xlu0 %449  }
  0x98   :  { %453 = vst.msk [vmem:[#allocation0 + $0x80] sm:$0x3] %vm346_vm7, %v450_v52   ;;  %455 = vst.msk [vmem:[#allocation0 + $0x86] sm:$0xc] %vm346_vm7, %v450_v52  }
  0x99   :  { %v475_v53 = vpop.permute.xlu1 %474  }
  0x9a   :  { %477 = vst.msk [vmem:[#allocation0] sm:$0x3] %vm476_vm8, %v475_v53   ;;  %479 = vst.msk [vmem:[#allocation0 + $0x6] sm:$0xc] %vm476_vm8, %v475_v53  }
  0x9b   :  { %481 = vst.msk [vmem:[#allocation0 + $0xc] sm:$0x30] %vm476_vm8, %v475_v53   ;;  %483 = vst.msk [vmem:[#allocation0 + $0x12] sm:$0xc0] %vm476_vm8, %v475_v53  }
  0x9c   :  { %v503_v54 = vpop.permute.xlu0 %502  }
  0x9d   :  { %506 = vst.msk [vmem:[#allocation0 + $0x20] sm:$0x3] %vm476_vm8, %v503_v54   ;;  %508 = vst.msk [vmem:[#allocation0 + $0x26] sm:$0xc] %vm476_vm8, %v503_v54  }
  0x9e   :  { %510 = vst.msk [vmem:[#allocation0 + $0x2c] sm:$0x30] %vm476_vm8, %v503_v54   ;;  %512 = vst.msk [vmem:[#allocation0 + $0x32] sm:$0xc0] %vm476_vm8, %v503_v54   ;;  %v532_v55 = vpop.permute.xlu1 %531  }
  0x9f   :  { %535 = vst.msk [vmem:[#allocation0 + $0x40] sm:$0x3] %vm476_vm8, %v532_v55   ;;  %537 = vst.msk [vmem:[#allocation0 + $0x46] sm:$0xc] %vm476_vm8, %v532_v55  }
  0xa0   :  { %539 = vst.msk [vmem:[#allocation0 + $0x4c] sm:$0x30] %vm476_vm8, %v532_v55   ;;  %541 = vst.msk [vmem:[#allocation0 + $0x52] sm:$0xc0] %vm476_vm8, %v532_v55  }
  0xa1   :  { %v561_v56 = vpop.permute.xlu0 %560  }
  0xa2   :  { %564 = vst.msk [vmem:[#allocation0 + $0x60] sm:$0x3] %vm476_vm8, %v561_v56   ;;  %566 = vst.msk [vmem:[#allocation0 + $0x66] sm:$0xc] %vm476_vm8, %v561_v56   ;;  %v580_v57 = vpop.permute.xlu1 %579  }
  0xa3   :  { %568 = vst.msk [vmem:[#allocation0 + $0x6c] sm:$0x30] %vm476_vm8, %v561_v56   ;;  %570 = vst.msk [vmem:[#allocation0 + $0x72] sm:$0xc0] %vm476_vm8, %v561_v56  }
  0xa4   :  { %583 = vst.msk [vmem:[#allocation0 + $0x80] sm:$0x3] %vm476_vm8, %v580_v57   ;;  %585 = vst.msk [vmem:[#allocation0 + $0x86] sm:$0xc] %vm476_vm8, %v580_v57  }
  0xa5   :  { %v605_v58 = vpop.permute.xlu0 %604  }
  0xa6   :  { %607 = vst.msk [vmem:[#allocation0] sm:$0x3] %vm606_vm9, %v605_v58   ;;  %609 = vst.msk [vmem:[#allocation0 + $0x6] sm:$0xc] %vm606_vm9, %v605_v58  }
  0xa7   :  { %611 = vst.msk [vmem:[#allocation0 + $0xc] sm:$0x30] %vm606_vm9, %v605_v58   ;;  %613 = vst.msk [vmem:[#allocation0 + $0x12] sm:$0xc0] %vm606_vm9, %v605_v58   ;;  %v633_v59 = vpop.permute.xlu1 %632  }
  0xa8   :  { %636 = vst.msk [vmem:[#allocation0 + $0x20] sm:$0x3] %vm606_vm9, %v633_v59   ;;  %638 = vst.msk [vmem:[#allocation0 + $0x26] sm:$0xc] %vm606_vm9, %v633_v59  }
  0xa9   :  { %640 = vst.msk [vmem:[#allocation0 + $0x2c] sm:$0x30] %vm606_vm9, %v633_v59   ;;  %642 = vst.msk [vmem:[#allocation0 + $0x32] sm:$0xc0] %vm606_vm9, %v633_v59  }
  0xaa   :  { %v662_v60 = vpop.permute.xlu0 %661  }
  0xab   :  { %665 = vst.msk [vmem:[#allocation0 + $0x40] sm:$0x3] %vm606_vm9, %v662_v60   ;;  %667 = vst.msk [vmem:[#allocation0 + $0x46] sm:$0xc] %vm606_vm9, %v662_v60  }
  0xac   :  { %669 = vst.msk [vmem:[#allocation0 + $0x4c] sm:$0x30] %vm606_vm9, %v662_v60   ;;  %671 = vst.msk [vmem:[#allocation0 + $0x52] sm:$0xc0] %vm606_vm9, %v662_v60   ;;  %v691_v61 = vpop.permute.xlu1 %690  }
  0xad   :  { %694 = vst.msk [vmem:[#allocation0 + $0x60] sm:$0x3] %vm606_vm9, %v691_v61   ;;  %696 = vst.msk [vmem:[#allocation0 + $0x66] sm:$0xc] %vm606_vm9, %v691_v61  }
  0xae   :  { %698 = vst.msk [vmem:[#allocation0 + $0x6c] sm:$0x30] %vm606_vm9, %v691_v61   ;;  %700 = vst.msk [vmem:[#allocation0 + $0x72] sm:$0xc0] %vm606_vm9, %v691_v61   ;;  %v710_v62 = vpop.permute.xlu0 %709  }
  0xaf   :  { %713 = vst.msk [vmem:[#allocation0 + $0x80] sm:$0x3] %vm606_vm9, %v710_v62   ;;  %715 = vst.msk [vmem:[#allocation0 + $0x86] sm:$0xc] %vm606_vm9, %v710_v62  }
  0xb0   :  { %v735_v63 = vpop.permute.xlu1 %734  }
  0xb1   :  { %737 = vst.msk [vmem:[#allocation0] sm:$0x3] %vm736_vm10, %v735_v63   ;;  %739 = vst.msk [vmem:[#allocation0 + $0x6] sm:$0xc] %vm736_vm10, %v735_v63  }
  0xb2   :  { %741 = vst.msk [vmem:[#allocation0 + $0xc] sm:$0x30] %vm736_vm10, %v735_v63   ;;  %743 = vst.msk [vmem:[#allocation0 + $0x12] sm:$0xc0] %vm736_vm10, %v735_v63  }
  0xb3   :  { %v763_v0 = vpop.permute.xlu0 %762  }
  0xb4   :  { %766 = vst.msk [vmem:[#allocation0 + $0x20] sm:$0x3] %vm736_vm10, %v763_v0   ;;  %768 = vst.msk [vmem:[#allocation0 + $0x26] sm:$0xc] %vm736_vm10, %v763_v0  }
  0xb5   :  { %770 = vst.msk [vmem:[#allocation0 + $0x2c] sm:$0x30] %vm736_vm10, %v763_v0   ;;  %772 = vst.msk [vmem:[#allocation0 + $0x32] sm:$0xc0] %vm736_vm10, %v763_v0   ;;  %v792_v1 = vpop.permute.xlu1 %791  }
  0xb6   :  { %795 = vst.msk [vmem:[#allocation0 + $0x40] sm:$0x3] %vm736_vm10, %v792_v1   ;;  %797 = vst.msk [vmem:[#allocation0 + $0x46] sm:$0xc] %vm736_vm10, %v792_v1  }
  0xb7   :  { %799 = vst.msk [vmem:[#allocation0 + $0x4c] sm:$0x30] %vm736_vm10, %v792_v1   ;;  %801 = vst.msk [vmem:[#allocation0 + $0x52] sm:$0xc0] %vm736_vm10, %v792_v1  }
  0xb8   :  { %v821_v2 = vpop.permute.xlu0 %820  }
  0xb9   :  { %824 = vst.msk [vmem:[#allocation0 + $0x60] sm:$0x3] %vm736_vm10, %v821_v2   ;;  %826 = vst.msk [vmem:[#allocation0 + $0x66] sm:$0xc] %vm736_vm10, %v821_v2   ;;  %v840_v3 = vpop.permute.xlu1 %839  }
  0xba   :  { %828 = vst.msk [vmem:[#allocation0 + $0x6c] sm:$0x30] %vm736_vm10, %v821_v2   ;;  %830 = vst.msk [vmem:[#allocation0 + $0x72] sm:$0xc0] %vm736_vm10, %v821_v2  }
  0xbb   :  { %843 = vst.msk [vmem:[#allocation0 + $0x80] sm:$0x3] %vm736_vm10, %v840_v3   ;;  %845 = vst.msk [vmem:[#allocation0 + $0x86] sm:$0xc] %vm736_vm10, %v840_v3  }
  0xbc   :  { %v865_v4 = vpop.permute.xlu0 %864  }
  0xbd   :  { %867 = vst.msk [vmem:[#allocation0] sm:$0x3] %vm866_vm11, %v865_v4   ;;  %869 = vst.msk [vmem:[#allocation0 + $0x6] sm:$0xc] %vm866_vm11, %v865_v4  }
  0xbe   :  { %871 = vst.msk [vmem:[#allocation0 + $0xc] sm:$0x30] %vm866_vm11, %v865_v4   ;;  %873 = vst.msk [vmem:[#allocation0 + $0x12] sm:$0xc0] %vm866_vm11, %v865_v4   ;;  %v893_v5 = vpop.permute.xlu1 %892  }
  0xbf   :  { %896 = vst.msk [vmem:[#allocation0 + $0x20] sm:$0x3] %vm866_vm11, %v893_v5   ;;  %898 = vst.msk [vmem:[#allocation0 + $0x26] sm:$0xc] %vm866_vm11, %v893_v5  }
  0xc0   :  { %900 = vst.msk [vmem:[#allocation0 + $0x2c] sm:$0x30] %vm866_vm11, %v893_v5   ;;  %902 = vst.msk [vmem:[#allocation0 + $0x32] sm:$0xc0] %vm866_vm11, %v893_v5  }
  0xc1   :  { %v922_v6 = vpop.permute.xlu0 %921  }
  0xc2   :  { %925 = vst.msk [vmem:[#allocation0 + $0x40] sm:$0x3] %vm866_vm11, %v922_v6   ;;  %927 = vst.msk [vmem:[#allocation0 + $0x46] sm:$0xc] %vm866_vm11, %v922_v6  }
  0xc3   :  { %929 = vst.msk [vmem:[#allocation0 + $0x4c] sm:$0x30] %vm866_vm11, %v922_v6   ;;  %931 = vst.msk [vmem:[#allocation0 + $0x52] sm:$0xc0] %vm866_vm11, %v922_v6  }
  0xc4   :  { %v980_v7 = vld [vmem:[#allocation0] sm:$0x3]  ;;  %v985_v8 = vld [vmem:[#allocation0 + $0x8] sm:$0x3] }
  0xc5   :  { %v991_v9 = vld [vmem:[#allocation0 + $0x10] sm:$0x3]  ;;  %v951_v10 = vpop.permute.xlu1 %950   ;;  %983 = vst [vmem:[%s2026_s1] sm:$0x3] %v980_v7  ;;  %1251 = vst [vmem:[%s2026_s1 + $0x2] sm:$0x3] %v985_v8 }
  0xc6   :  { %1252 = vst [vmem:[%s2026_s1 + $0x4] sm:$0x3] %v991_v9  ;;  %v998_v11 = vld [vmem:[#allocation0 + $0x18] sm:$0x3]  ;;  %954 = vst.msk [vmem:[#allocation0 + $0x60] sm:$0x3] %vm866_vm11, %v951_v10   ;;  %v970_v12 = vpop.permute.xlu0 %969  }
  0xc7   :  { %956 = vst.msk [vmem:[#allocation0 + $0x66] sm:$0xc] %vm866_vm11, %v951_v10   ;;  %958 = vst.msk [vmem:[#allocation0 + $0x6c] sm:$0x30] %vm866_vm11, %v951_v10   ;;  %v1005_v13 = vld [vmem:[#allocation0 + $0x20] sm:$0x3] }
  0xc8   :  { %960 = vst.msk [vmem:[#allocation0 + $0x72] sm:$0xc0] %vm866_vm11, %v951_v10   ;;  %1253 = vst [vmem:[%s2026_s1 + $0x6] sm:$0x3] %v998_v11  ;;  %v1012_v14 = vld [vmem:[#allocation0 + $0x28] sm:$0x3] }
  0xc9   :  { %973 = vst.msk [vmem:[#allocation0 + $0x80] sm:$0x3] %vm866_vm11, %v970_v12   ;;  %975 = vst.msk [vmem:[#allocation0 + $0x86] sm:$0xc] %vm866_vm11, %v970_v12   ;;  %v1019_v15 = vld [vmem:[#allocation0 + $0x30] sm:$0x3] }
  0xca   :  { %1254 = vst [vmem:[%s2026_s1 + $0x8] sm:$0x3] %v1005_v13  ;;  %1255 = vst [vmem:[%s2026_s1 + $0xa] sm:$0x3] %v1012_v14  ;;  %v1026_v16 = vld [vmem:[#allocation0 + $0x38] sm:$0x3] }
  0xcb   :  { %1256 = vst [vmem:[%s2026_s1 + $0xc] sm:$0x3] %v1019_v15  ;;  %1257 = vst [vmem:[%s2026_s1 + $0xe] sm:$0x3] %v1026_v16  ;;  %v1033_v17 = vld [vmem:[#allocation0 + $0x40] sm:$0x3] }
  0xcc   :  { %v1040_v18 = vld [vmem:[#allocation0 + $0x48] sm:$0x3]  ;;  %v1047_v19 = vld [vmem:[#allocation0 + $0x50] sm:$0x3]  ;;  %1258 = vst [vmem:[%s2026_s1 + $0x10] sm:$0x3] %v1033_v17 }
  0xcd   :  { %1259 = vst [vmem:[%s2026_s1 + $0x12] sm:$0x3] %v1040_v18  ;;  %1260 = vst [vmem:[%s2026_s1 + $0x14] sm:$0x3] %v1047_v19  ;;  %v1054_v20 = vld [vmem:[#allocation0 + $0x58] sm:$0x3] }
  0xce   :  { %1261 = vst [vmem:[%s2026_s1 + $0x16] sm:$0x3] %v1054_v20  ;;  %v1061_v21 = vld [vmem:[#allocation0 + $0x60] sm:$0x3]  ;;  %v1068_v22 = vld [vmem:[#allocation0 + $0x68] sm:$0x3] }
  0xcf   :  { %v1075_v23 = vld [vmem:[#allocation0 + $0x70] sm:$0x3]  ;;  %1262 = vst [vmem:[%s2026_s1 + $0x18] sm:$0x3] %v1061_v21  ;;  %1263 = vst [vmem:[%s2026_s1 + $0x1a] sm:$0x3] %v1068_v22 }
  0xd0   :  { %1264 = vst [vmem:[%s2026_s1 + $0x1c] sm:$0x3] %v1075_v23  ;;  %v1082_v24 = vld [vmem:[#allocation0 + $0x78] sm:$0x3]  ;;  %v1089_v25 = vld [vmem:[#allocation0 + $0x80] sm:$0x3] }
  0xd1   :  { %v1096_v26 = vld [vmem:[#allocation0 + $0x88] sm:$0x3]  ;;  %1265 = vst [vmem:[%s2026_s1 + $0x1e] sm:$0x3] %v1082_v24  ;;  %1266 = vst [vmem:[%s2026_s1 + $0x20] sm:$0x3] %v1089_v25 }
  0xd2   :  { %1267 = vst [vmem:[%s2026_s1 + $0x22] sm:$0x3] %v1096_v26 }

// kernel: dcn_forward.2
= control target key start
LH: loop header
LB: loop body
LE: loop exit
PB: predicated region body
PF: predicated region fallthrough
CT: control target
= control target key end

     0   :  { %s611_s12 = smov 0   ;;  %s613_s13 = smov 0   ;;  %s714_s0 = inlined_call_operand.vmem [shape: f32[2,48,256], index: 0, kind: input, shape index: {}]   ;;  %s715_s1 = inlined_call_operand.vmem [shape: f32[40,48], index: 1, kind: input, shape index: {}]   ;;  %s716_s2 = inlined_call_operand.vmem [shape: f32[40,1], index: 2, kind: input, shape index: {}]   ;;  %s717_s3 = inlined_call_operand.vmem [shape: f32[2,40,256], index: 3, kind: output, shape index: {}]  }
   0x1   :  { %s615_s14 = smov 0  }
   0x2 LB: > { %s25_s15 = sadd.s32 1, %s583_s13  ;;  %p493_p0 = scmp.ge.s32.totalorder %s587_s14, 1  ;;  %s587_s14 = sphi %s615_s14, %s13_s14   ;;  %s583_s13 = sphi %s613_s13, %s719_s13   ;;  %s579_s12 = sphi %s611_s12, %s718_s12  }
   0x3   : > { %p27_p1 = scmp.ge.s32.totalorder %s25_s15, 2  ;;  %p158_p2 = scmp.lt.s32.totalorder %s587_s14, 3 }
   0x5   : > { %s721_s15 = smov (%p27_p1, %s25_s15), 0  ;;  %p159_p3 = pnand %p493_p0, %p158_p2 }
   0x6   : > { %p191_p4 = scmp.lt.s32.totalorder (!%p159_p3), %s579_s12, 1 }
   0x7   : > { %162 = sbr.rel (%p159_p3) target bundleno = 264 (0x108), region = 32 }
   0xc   : > { %v589_v0 = vmov 0.0   ;;  %v230_v1 = vld [vmem:[%s716_s2 + $0x18] sm:$0xff]  ;;  %s723_s12 = smov (!%p191_p4, %s579_s12), 1  ;;  %v590_v2 = vmov 0   ;;  %v227_v3 = vld [vmem:[%s716_s2] sm:$0xff]  ;;  %v228_v5 = vld [vmem:[%s716_s2 + $0x8] sm:$0xff] }
   0xd   : > { %337 = vmatprep.mubr.f32.mxu0 %v589_v0  ;;  %355 = vmatprep.mubr.f32.mxu1 %v589_v0  ;;  %s519_s20 = smul.u32 96, %s723_s12  ;;  %v231_v4 = vld [vmem:[%s716_s2 + $0x20] sm:$0xff]  ;;  %vm257_vm0 = vcmask 392192   ;;  %v213_v19 = vld [vmem:[%s715_s1 + $0x18] sm:$0xff]  ;;  %v229_v20 = vld [vmem:[%s716_s2 + $0x10] sm:$0xff] }
   0xe   : > { %547 = vset.pattern.permute.xlu0 %v590_v2  ;;  %548 = vset.pattern.permute.xlu1 %v590_v2  ;;  %v210_v18 = vld [vmem:[%s715_s1] sm:$0xff]  ;;  %v211_v21 = vld [vmem:[%s715_s1 + $0x8] sm:$0xff]  ;;  %v212_v23 = vld [vmem:[%s715_s1 + $0x10] sm:$0xff]  ;;  %s520_s17 = smul.u32 80, %s723_s12 }
   0xf   : > { %249 = vperm.xlu0 %547, %v230_v1   ;;  %234 = vperm.xlu1 %548, %v227_v3   ;;  %s649_s27 = scalar_lea.vmem %s714_s0, %s519_s20  ;;  %v214_v22 = vld [vmem:[%s715_s1 + $0x20] sm:$0xff] }
  0x10   : > { %v226_v6 = vld [vmem:[%s649_s27 + $0x58] sm:$0xff]  ;;  %v225_v7 = vld [vmem:[%s649_s27 + $0x50] sm:$0xff]  ;;  %v224_v8 = vld [vmem:[%s649_s27 + $0x48] sm:$0xff]  ;;  %s693_s20 = scalar_lea.vmem %s717_s3, %s520_s17 }
  0x11   : > { %293 = vmatprep.subr.mxu0 %v226_v6  ;;  %507 = vmatprep.subr.mxu1 %v226_v6  ;;  %v223_v9 = vld [vmem:[%s649_s27 + $0x40] sm:$0xff]  ;;  %v222_v10 = vld [vmem:[%s649_s27 + $0x38] sm:$0xff]  ;;  %v221_v11 = vld [vmem:[%s649_s27 + $0x30] sm:$0xff] }
  0x12   : > { %294 = vmatpush1.msra.mxu0 %v225_v7  ;;  %513 = vmatpush1.msra.mxu1 %v225_v7  ;;  %v220_v12 = vld [vmem:[%s649_s27 + $0x28] sm:$0xff]  ;;  %v219_v13 = vld [vmem:[%s649_s27 + $0x20] sm:$0xff]  ;;  %v218_v14 = vld [vmem:[%s649_s27 + $0x18] sm:$0xff] }
  0x13   : > { %254 = vperm.xlu0 %547, %v231_v4   ;;  %239 = vperm.xlu1 %548, %v228_v5   ;;  %v217_v15 = vld [vmem:[%s649_s27 + $0x10] sm:$0xff]  ;;  %v216_v16 = vld [vmem:[%s649_s27 + $0x8] sm:$0xff]  ;;  %v215_v17 = vld [vmem:[%s649_s27] sm:$0xff] }
  0x14   : > { %295 = vmatprep.subr.mxu0 %v224_v8  ;;  %508 = vmatprep.subr.mxu1 %v224_v8 }
  0x15   : > { %296 = vmatpush1.msra.mxu0 %v223_v9  ;;  %514 = vmatpush1.msra.mxu1 %v223_v9 }
  0x16   : > { %297 = vmatprep.subr.mxu0 %v222_v10  ;;  %509 = vmatprep.subr.mxu1 %v222_v10 }
  0x17   : > { %298 = vmatpush1.msra.mxu0 %v221_v11  ;;  %515 = vmatpush1.msra.mxu1 %v221_v11 }
  0x18   : > { %299 = vmatprep.subr.mxu0 %v220_v12  ;;  %510 = vmatprep.subr.mxu1 %v220_v12 }
  0x19   : > { %300 = vmatpush1.msra.mxu0 %v219_v13  ;;  %516 = vmatpush1.msra.mxu1 %v219_v13 }
  0x1a   : > { %301 = vmatprep.subr.mxu0 %v218_v14  ;;  %511 = vmatprep.subr.mxu1 %v218_v14 }
  0x1b   : > { %302 = vmatpush1.msra.mxu0 %v217_v15  ;;  %517 = vmatpush1.msra.mxu1 %v217_v15 }
  0x1c   : > { %303 = vmatprep.subr.mxu0 %v216_v16  ;;  %512 = vmatprep.subr.mxu1 %v216_v16 }
  0x1d   : > { %304 = vmatpush1.msra.mxu0 %v215_v17  ;;  %518 = vmatpush1.msra.mxu1 %v215_v17 }
  0x1e   : > { %496 = vmatmul.mubr.msk.f32.vlgmr.msra.gmra.mxu0 %vm257_vm0, %v210_v18  ;;  %499 = vmatmul.mubr.msk.f32.vlgmr.msra.gmra.mxu1 %vm257_vm0, %v213_v19 }
  0x1f   : > { %343 = vmatprep.mubr.f32.mxu0 %v589_v0  ;;  %361 = vmatprep.mubr.f32.mxu1 %v589_v0 }
  0x20   : > { %244 = vperm.xlu0 %547, %v229_v20  }
  0x22   : > { %497 = vmatmul.mubr.msk.f32.gmra.mxu0 %vm257_vm0, %v211_v21  ;;  %500 = vmatmul.mubr.msk.f32.gmra.mxu1 %vm257_vm0, %v214_v22 }
  0x23   : > { %349 = vmatprep.mubr.f32.mxu0 %v589_v0 }
  0x26   : > { %498 = vmatmul.mubr.msk.f32.gmra.mxu0 %vm257_vm0, %v212_v23 }
  0x8a   : > { %v250_v24 = vpop.permute.xlu0 %249  ;;  %v235_v25 = vpop.permute.xlu1 %234 }
  0x8e   : > { %v255_v28 = vpop.permute.xlu0 %254  ;;  %v240_v31 = vpop.permute.xlu1 %239 }
  0x9b   : > { %v245_v47 = vpop.permute.xlu0 %244 }
  0xde   : > { %v339_v26 = vpop.f32.mrf.mxu0  ;;  %v357_v27 = vpop.f32.mrf.mxu1 }
  0xdf   : > { %v358_v29 = vadd.f32 %v357_v27, %v250_v24  ;;  %v340_v30 = vadd.f32 %v339_v26, %v235_v25 }
  0xe0   : > { %v341_v32 = vpop.f32.mrf.mxu0  ;;  %v359_v33 = vpop.f32.mrf.mxu1 }
  0xe1   : > { %v501_v34 = vmul.f32 -1.442695, %v358_v29  ;;  %v360_v35 = vadd.f32 %v359_v33, %v250_v24  ;;  %v342_v36 = vadd.f32 %v341_v32, %v235_v25  ;;  %368 = vst [vmem:[%s693_s20] sm:$0xff] %v340_v30 }
  0xe2   : > { %v345_v37 = vpop.f32.mrf.mxu0  ;;  %v363_v38 = vpop.f32.mrf.mxu1 }
  0xe3   : > { %549 = vpow2.f32 %v501_v34  ;;  %v502_v39 = vmul.f32 -1.442695, %v360_v35  ;;  %v364_v40 = vadd.f32 %v363_v38, %v255_v28  ;;  %369 = vst [vmem:[%s693_s20 + $0x8] sm:$0xff] %v342_v36  ;;  %v346_v41 = vadd.f32 %v345_v37, %v240_v31 }
  0xe4   : > { %v347_v42 = vpop.f32.mrf.mxu0  ;;  %v365_v43 = vpop.f32.mrf.mxu1 }
  0xe5   : > { %551 = vpow2.f32 %v502_v39  ;;  %v503_v44 = vmul.f32 -1.442695, %v364_v40  ;;  %v366_v45 = vadd.f32 %v365_v43, %v255_v28  ;;  %v348_v46 = vadd.f32 %v347_v42, %v240_v31  ;;  %370 = vst [vmem:[%s693_s20 + $0x10] sm:$0xff] %v346_v41 }
  0xe6   : > { %v351_v48 = vpop.f32.mrf.mxu0 }
  0xe7   : > { %553 = vpow2.f32 %v503_v44  ;;  %v504_v49 = vmul.f32 -1.442695, %v366_v45  ;;  %v352_v50 = vadd.f32 %v351_v48, %v245_v47  ;;  %371 = vst [vmem:[%s693_s20 + $0x18] sm:$0xff] %v348_v46 }
  0xe8   : > { %v353_v51 = vpop.f32.mrf.mxu0 }
  0xe9   : > { %555 = vpow2.f32 %v504_v49  ;;  %372 = vst [vmem:[%s693_s20 + $0x20] sm:$0xff] %v352_v50  ;;  %v354_v52 = vadd.f32 %v353_v51, %v245_v47 }
  0xeb   : > { %373 = vst [vmem:[%s693_s20 + $0x28] sm:$0xff] %v354_v52 }
  0xf0   : > { %v550_v53 = vpop.eup %549 }
  0xf1   : > { %v386_v54 = vadd.f32 1.0, %v550_v53 }
  0xf2   : > { %v552_v55 = vpop.eup %551 }
  0xf3   : > { %557 = vrcp.f32 %v386_v54  ;;  %v387_v56 = vadd.f32 1.0, %v552_v55 }
  0xf4   : > { %v554_v57 = vpop.eup %553 }
  0xf5   : > { %559 = vrcp.f32 %v387_v56  ;;  %v388_v58 = vadd.f32 1.0, %v554_v57 }
  0xf6   : > { %v556_v59 = vpop.eup %555 }
  0xf7   : > { %561 = vrcp.f32 %v388_v58  ;;  %v389_v60 = vadd.f32 1.0, %v556_v59 }
  0xf9   : > { %563 = vrcp.f32 %v389_v60 }
 0x100   : > { %v558_v61 = vpop.eup %557 }
 0x101   : > { %398 = vst [vmem:[%s693_s20 + $0x30] sm:$0xff] %v558_v61 }
 0x102   : > { %v560_v62 = vpop.eup %559 }
 0x103   : > { %399 = vst [vmem:[%s693_s20 + $0x38] sm:$0xff] %v560_v62 }
 0x104   : > { %v562_v63 = vpop.eup %561 }
 0x105   : > { %400 = vst [vmem:[%s693_s20 + $0x40] sm:$0xff] %v562_v63 }
 0x106   : > { %v564_v0 = vpop.eup %563 }
 0x107   : > { %401 = vst [vmem:[%s693_s20 + $0x48] sm:$0xff] %v564_v0 }
 0x108 PF: > { %s13_s14 = sadd.s32 1, %s587_s14   ;;  %s718_s12 = smov %s583_s13 }
 0x109   : > { %p10_p5 = scmp.ge.s32.totalorder %s13_s14, 4   ;;  %s719_s13 = smov %s721_s15 }
 0x10b   :  { %12 = sbr.rel (!%p10_p5) target bundleno = 2 (0x2), region = 62 }

// kernel: dcn_forward.3
= control target key start
LH: loop header
LB: loop body
LE: loop exit
PB: predicated region body
PF: predicated region fallthrough
CT: control target
= control target key end

     0   :  { %s505_s12 = smov 0   ;;  %s507_s13 = smov 0   ;;  %s547_s0 = inlined_call_operand.vmem [shape: bf16[2,48,256], index: 0, kind: input, shape index: {}]   ;;  %s548_s1 = inlined_call_operand.vmem [shape: bf16[16,48], index: 1, kind: input, shape index: {}]   ;;  %s549_s2 = inlined_call_operand.vmem [shape: f32[16,1], index: 2, kind: input, shape index: {}]   ;;  %s550_s3 = inlined_call_operand.vmem [shape: f32[2,16,256], index: 3, kind: output, shape index: {}]  }
   0x1   :  { %s509_s14 = smov 0  }
   0x2 LB: > { %s25_s15 = sadd.s32 1, %s478_s13  ;;  %p408_p0 = scmp.ge.s32.totalorder %s482_s14, 1  ;;  %s482_s14 = sphi %s509_s14, %s13_s14   ;;  %s478_s13 = sphi %s507_s13, %s552_s13   ;;  %s474_s12 = sphi %s505_s12, %s551_s12  }
   0x3   : > { %p27_p1 = scmp.ge.s32.totalorder %s25_s15, 2  ;;  %p158_p2 = scmp.lt.s32.totalorder %s482_s14, 3 }
   0x5   : > { %s554_s15 = smov (%p27_p1, %s25_s15), 0  ;;  %p159_p3 = pnand %p408_p0, %p158_p2 }
   0x6   : > { %p191_p4 = scmp.lt.s32.totalorder (!%p159_p3), %s474_s12, 1 }
   0x7   : > { %162 = sbr.rel (%p159_p3) target bundleno = 231 (0xe7), region = 32 }
   0xc   : > { %v484_v0 = vmov 0   ;;  %v219_v1 = vld [vmem:[%s549_s2] sm:$0xff]  ;;  %s556_s12 = smov (!%p191_p4, %s474_s12), 1  ;;  %v220_v2 = vld [vmem:[%s549_s2 + $0x8] sm:$0xff]  ;;  %vm266_vm0 = vcmask 392192  }
   0xd   : > { %302 = vmatprep.mubr.bf16.mxu0 %v484_v0  ;;  %449 = vset.pattern.permute.xlu0 %v484_v0  ;;  %s423_s20 = smul.u32 48, %s556_s12  ;;  %v459_v9 = vld [vmem:[%s548_s1] sm:$0xff]   ;;  %s422_s26 = sshll.u32 %s556_s12, 5 }
   0xe   : > { %223 = vperm.xlu0 %449, %v219_v1   ;;  %s208_s29 = scalar_lea.vmem %s550_s3, %s422_s26 }
   0xf   : > { %s198_s23 = scalar_lea.vmem %s547_s0, %s423_s20 }
  0x10   : > { %v450_v3 = vld [vmem:[%s198_s23 + $0x24] ss:$8 sps:$4 sm:$0xff]   ;;  %v452_v4 = vld [vmem:[%s198_s23 + $0x20] ss:$8 sps:$4 sm:$0xff]   ;;  %v453_v5 = vld [vmem:[%s198_s23 + $0x14] ss:$8 sps:$4 sm:$0xff]  }
  0x11   : > { %280 = vmatprep.subr.bf16.mxu0 %v450_v3  ;;  %v455_v6 = vld [vmem:[%s198_s23 + $0x10] ss:$8 sps:$4 sm:$0xff]   ;;  %v456_v7 = vld [vmem:[%s198_s23 + $0x4] ss:$8 sps:$4 sm:$0xff]   ;;  %v458_v8 = vld [vmem:[%s198_s23] ss:$8 sps:$4 sm:$0xff]  }
  0x12   : > { %228 = vperm.xlu0 %449, %v220_v2   ;;  %281 = vmatpush1.bf16.msra.mxu0 %v452_v4 }
  0x13   : > { %282 = vmatprep.subr.bf16.mxu0 %v453_v5 }
  0x16   : > { %283 = vmatpush1.bf16.msra.mxu0 %v455_v6 }
  0x17   : > { %284 = vmatprep.subr.bf16.mxu0 %v456_v7 }
  0x1a   : > { %285 = vmatpush1.bf16.msra.mxu0 %v458_v8 }
  0x1d   : > { %419 = vmatmul.mubr.msk.bf16.vlgmr.msra.gmra.mxu0 %vm266_vm0, %v459_v9 }
  0x89   : > { %v224_v10 = vpop.permute.xlu0 %223 }
  0x8d   : > { %v229_v15 = vpop.permute.xlu0 %228 }
  0xdd   : > { %v304_v11 = vpop.f32.mrf.mxu0 }
  0xde   : > { %v305_v12 = vadd.f32 %v304_v11, %v224_v10 }
  0xdf   : > { %v306_v13 = vpop.f32.mrf.mxu0 }
  0xe0   : > { %313 = vst [vmem:[%s208_s29] sm:$0xff] %v305_v12  ;;  %v307_v14 = vadd.f32 %v306_v13, %v224_v10 }
  0xe1   : > { %v308_v16 = vpop.f32.mrf.mxu0 }
  0xe2   : > { %314 = vst [vmem:[%s208_s29 + $0x8] sm:$0xff] %v307_v14  ;;  %v309_v17 = vadd.f32 %v308_v16, %v229_v15 }
  0xe3   : > { %v310_v18 = vpop.f32.mrf.mxu0 }
  0xe4   : > { %315 = vst [vmem:[%s208_s29 + $0x10] sm:$0xff] %v309_v17  ;;  %v311_v19 = vadd.f32 %v310_v18, %v229_v15 }
  0xe6   : > { %316 = vst [vmem:[%s208_s29 + $0x18] sm:$0xff] %v311_v19 }
  0xe7 PF: > { %s13_s14 = sadd.s32 1, %s482_s14   ;;  %s551_s12 = smov %s478_s13 }
  0xe8   : > { %p10_p5 = scmp.ge.s32.totalorder %s13_s14, 4   ;;  %s552_s13 = smov %s554_s15 }
  0xea   :  { %12 = sbr.rel (!%p10_p5) target bundleno = 2 (0x2), region = 62 }

</bundles_post_ra>
